<compile_context>
chip_gen: v7x
topology: tpu7x:2x2x1
jax: 0.10.0
libtpu: 0.0.40
codegen_flags: <defaults>
</compile_context>

<pallas_src>
import functools

import jax
import jax.numpy as jnp
from jax.experimental import pallas as pl
from jax.experimental.pallas import tpu as pltpu


def _round_up(x, m):
    return ((x + m - 1) // m) * m


def _double_conv_kernel(x_ref, w1_ref, b1_ref, w2_ref, b2_ref, m1_ref,
                        o_ref, s2_ref, *, K, Wc, L1, Lout, shift, slope,
                        precision):
    # x_ref : (Cin8, Hc*Wc)       zero-padded input canvas, spatial on lanes
    # w1_ref: (K*K, Cmid8, Cin8)  w1t[dy*K+dx, cm, ci] = W1[cm, ci, dy, dx]
    # w2_ref: (K*K, Cout, Cmid8)
    # b*_ref: (C, 1)              f32
    # m1_ref: (1, L1)             1.0 where the flat position is a valid conv1 col
    # o_ref : (Cout, Lout)        conv2 output on the flat canvas (lane-padded)
    # s2_ref: (Cmid8, Len2p)      persistent VMEM canvas = conv2's padded input
    cmid = s2_ref.shape[0]
    cout = w2_ref.shape[1]
    offs = [dy * Wc + dx for dy in range(K) for dx in range(K)]

    # ---- conv1: per-tap MXU matmuls over lane-dense shifted canvas windows ----
    # accumulator seeded with the broadcast bias (saves a zero pass + an add).
    h = jnp.broadcast_to(b1_ref[...], (cmid, L1)).astype(jnp.float32)
    for t, o in enumerate(offs):
        h = h + jnp.dot(w1_ref[t], x_ref[:, o:o + L1],
                        preferred_element_type=jnp.float32,
                        precision=precision)
    h = jnp.maximum(h, slope * h)          # F.leaky_relu (slope > 0)
    h = h * m1_ref[...]                    # zero inter-row garbage columns

    # ---- re-pad conv1 output into the conv2 canvas (stays in VMEM) -----------
    tail = s2_ref.shape[1] - (shift + L1)
    if shift > 0:
        s2_ref[:, :shift] = jnp.zeros((cmid, shift), s2_ref.dtype)
    if tail > 0:
        s2_ref[:, shift + L1:] = jnp.zeros((cmid, tail), s2_ref.dtype)
    s2_ref[:, shift:shift + L1] = h.astype(s2_ref.dtype)

    # ---- conv2: same per-tap MXU formulation ----------------------------------
    y = jnp.broadcast_to(b2_ref[...], (cout, Lout)).astype(jnp.float32)
    for t, o in enumerate(offs):
        y = y + jnp.dot(w2_ref[t], s2_ref[:, o:o + Lout],
                        preferred_element_type=jnp.float32,
                        precision=precision)
    o_ref[...] = y.astype(o_ref.dtype)     # unmasked lane-dense store (Lout % 128 == 0)


def double_conv_forward(img_nchw, params, *, mxu_dtype=jnp.float32):
    """Matches DoubleConv.forward: conv1 -> leaky_relu -> conv2 (NCHW in/out).

    mxu_dtype: dtype fed to the MXU (use jnp.bfloat16 on v6e/v7x for full MXU
    throughput; f32 accumulation is kept either way).
    """
    w1, b1 = params["w1"], params["b1"]
    w2, b2 = params["w2"], params["b2"]
    stride = params.get("stride", 1)
    stride2 = params.get("stride2", 1)
    padding = params.get("padding", 0)
    if stride != 1 or stride2 != 1:
        # TODO(synk): strided DoubleConv not supported by the fused flat-canvas kernel.
        raise NotImplementedError("fused Pallas DoubleConv requires stride=stride2=1")

    N, Cin, H, W = img_nchw.shape
    Cmid, _, K, _ = w1.shape
    Cout = w2.shape[0]
    p = padding
    if not (0 <= 2 * p <= K - 1):
        raise NotImplementedError("padding must satisfy 2*padding <= k-1")

    Wc = W + 2 * p                        # canvas row pitch shared by both layers
    Hc = H + 2 * p
    H1, W1 = Hc - K + 1, Wc - K + 1       # conv1 output size
    Hp2, Wp2 = H1 + 2 * p, W1 + 2 * p     # conv2 padded-input size (fits in pitch Wc)
    H2, W2 = Hp2 - K + 1, Wp2 - K + 1     # conv2 output size
    L1 = (H1 - 1) * Wc + W1               # flat extent of conv1 output on the canvas
    L2 = (H2 - 1) * Wc + W2               # flat extent of conv2 output
    Lout = _round_up(L2, 128)             # lane-padded output width -> unmasked stores
    shift = p * Wc + p                    # flat offset of conv1 output in s2 canvas
    Len2p = Hp2 * Wc + (Lout - L2)        # s2 canvas width (covers the padded tail)

    # pad channel dims to full 8-sublane groups (zero channels contribute zero)
    Cin8 = _round_up(Cin, 8)
    Cmid8 = _round_up(Cmid, 8)

    cdt = jnp.dtype(mxu_dtype)
    precision = (jax.lax.Precision.HIGHEST if cdt == jnp.float32
                 else jax.lax.Precision.DEFAULT)

    # ---- wrapper-side layout plumbing (plain XLA) -----------------------------
    xp = jnp.pad(img_nchw, ((0, 0), (0, Cin8 - Cin), (p, p), (p, p)))
    xp = xp.reshape(N, Cin8, Hc * Wc).astype(cdt)
    w1p = jnp.pad(w1, ((0, Cmid8 - Cmid), (0, Cin8 - Cin), (0, 0), (0, 0)))
    w2p = jnp.pad(w2, ((0, 0), (0, Cmid8 - Cmid), (0, 0), (0, 0)))
    # per-tap weight matrices: w*t[dy*K+dx] is the (C_out, C_in) matrix of tap (dy,dx)
    w1t = jnp.transpose(w1p, (2, 3, 0, 1)).reshape(K * K, Cmid8, Cin8).astype(cdt)
    w2t = jnp.transpose(w2p, (2, 3, 0, 1)).reshape(K * K, Cout, Cmid8).astype(cdt)
    b1p = jnp.pad(b1.astype(jnp.float32), ((0, Cmid8 - Cmid),)).reshape(Cmid8, 1)
    b2p = b2.astype(jnp.float32).reshape(Cout, 1)
    mask1 = ((jnp.arange(L1, dtype=jnp.int32) % Wc) < W1)
    mask1 = mask1.astype(jnp.float32)[None, :]

    kernel = functools.partial(_double_conv_kernel, K=K, Wc=Wc, L1=L1, Lout=Lout,
                               shift=shift, slope=0.01, precision=precision)
    out_flat = pl.pallas_call(
        kernel,
        out_shape=jax.ShapeDtypeStruct((N, Cout, Lout), img_nchw.dtype),
        grid=(N,),    # >= 2 "parallel" steps -> shards across v7x's two TensorCores
        in_specs=[
            pl.BlockSpec((None, Cin8, Hc * Wc), lambda n: (n, 0, 0)),
            pl.BlockSpec((K * K, Cmid8, Cin8), lambda n: (0, 0, 0)),
            pl.BlockSpec((Cmid8, 1), lambda n: (0, 0)),
            pl.BlockSpec((K * K, Cout, Cmid8), lambda n: (0, 0, 0)),
            pl.BlockSpec((Cout, 1), lambda n: (0, 0)),
            pl.BlockSpec((1, L1), lambda n: (0, 0)),
        ],
        out_specs=pl.BlockSpec((None, Cout, Lout), lambda n: (n, 0, 0)),
        scratch_shapes=[pltpu.VMEM((Cmid8, Len2p), cdt)],
        compiler_params=pltpu.CompilerParams(
            dimension_semantics=("parallel",),
            vmem_limit_bytes=32 * 1024 * 1024),
    )(xp, w1t, b1p, w2t, b2p, mask1)

    # unflatten: take whole canvas rows, reshape, crop the valid columns
    need = H2 * Wc
    if Lout < need:
        out_flat = jnp.pad(out_flat, ((0, 0), (0, 0), (0, need - Lout)))
    out = out_flat[:, :, :need].reshape(N, Cout, H2, Wc)[:, :, :, :W2]
    return out


# ----------------------------- pure-JAX reference ---------------------------

def double_conv_reference(img_nchw, params):
    w1, b1, w2, b2 = params["w1"], params["b1"], params["w2"], params["b2"]
    s1 = params.get("stride", 1)
    s2 = params.get("stride2", 1)
    p = params.get("padding", 0)
    dn = ("NCHW", "OIHW", "NCHW")
    y = jax.lax.conv_general_dilated(img_nchw, w1, (s1, s1), [(p, p), (p, p)],
                                     dimension_numbers=dn,
                                     precision=jax.lax.Precision.HIGHEST)
    y = y + b1.reshape(1, -1, 1, 1)
    y = jnp.where(y >= 0, y, 0.01 * y)
    y = jax.lax.conv_general_dilated(y, w2, (s2, s2), [(p, p), (p, p)],
                                     dimension_numbers=dn,
                                     precision=jax.lax.Precision.HIGHEST)
    y = y + b2.reshape(1, -1, 1, 1)
    return y


if __name__ == "__main__":
    key = jax.random.PRNGKey(0)
    N, cin, cout = 2, 4, 8
    cmid = cin                      # DoubleConv default: cmid=None -> cin
    H = W = 16
    k, stride, padding, stride2 = 3, 1, 1, 1   # DoubleConv(cin, cout, 3, padding=1)

    k_img, k_w1, k_b1, k_w2, k_b2 = jax.random.split(key, 5)
    img = jax.random.normal(k_img, (N, cin, H, W), jnp.float32)
    # kaiming-uniform-like init on Conv2d weight shapes (OIHW), small random biases
    bound1 = (6.0 / (cin * k * k)) ** 0.5
    bound2 = (6.0 / (cmid * k * k)) ** 0.5
    params = {
        "w1": jax.random.uniform(k_w1, (cmid, cin, k, k), jnp.float32, -bound1, bound1),
        "b1": jax.random.uniform(k_b1, (cmid,), jnp.float32, -0.1, 0.1),
        "w2": jax.random.uniform(k_w2, (cout, cmid, k, k), jnp.float32, -bound2, bound2),
        "b2": jax.random.uniform(k_b2, (cout,), jnp.float32, -0.1, 0.1),
        "stride": stride,
        "stride2": stride2,
        "padding": padding,
    }

    out = jax.block_until_ready(double_conv_forward(img, params))
    assert out.shape == (N, cout, H, W), out.shape

    ref = jax.block_until_ready(double_conv_reference(img, params))
    max_err = float(jnp.max(jnp.abs(out - ref)))
    assert jnp.allclose(out, ref, atol=2e-4, rtol=2e-4), max_err

    print("KERNEL_OK")
</pallas_src>

<mosaic_0001>
module attributes {stable_mosaic.version = 11 : i64} {
  func.func @_double_conv_kernel(%arg0: i32, %arg1: memref<1x8x324xf32, #tpu.memory_space<vmem>>, %arg2: memref<9x8x8xf32, #tpu.memory_space<vmem>>, %arg3: memref<8x1xf32, #tpu.memory_space<vmem>>, %arg4: memref<9x8x8xf32, #tpu.memory_space<vmem>>, %arg5: memref<8x1xf32, #tpu.memory_space<vmem>>, %arg6: memref<1x286xf32, #tpu.memory_space<vmem>>, %arg7: memref<1x8x384xf32, #tpu.memory_space<vmem>>, %arg8: memref<8x422xf32, #tpu.memory_space<vmem>>) attributes {dimension_semantics = [#tpu.dimension_semantics<parallel>], iteration_bounds = array<i64: 2>, scalar_prefetch = 0 : i64, scratch_operands = 1 : i64, tpu.core_type = #tpu.core_type<tc>, window_params = [{transform_indices = @transform_0, window_bounds = array<i64: 1, 8, 324>}, {pipeline_mode = #tpu.pipeline_mode<synchronous>, transform_indices = @transform_1, window_bounds = array<i64: 9, 8, 8>}, {pipeline_mode = #tpu.pipeline_mode<synchronous>, transform_indices = @transform_2, window_bounds = array<i64: 8, 1>}, {pipeline_mode = #tpu.pipeline_mode<synchronous>, transform_indices = @transform_3, window_bounds = array<i64: 9, 8, 8>}, {pipeline_mode = #tpu.pipeline_mode<synchronous>, transform_indices = @transform_4, window_bounds = array<i64: 8, 1>}, {pipeline_mode = #tpu.pipeline_mode<synchronous>, transform_indices = @transform_5, window_bounds = array<i64: 1, 286>}, {transform_indices = @transform_6, window_bounds = array<i64: 1, 8, 384>}]} {
    %c0 = arith.constant 0 : index
    %c0_0 = arith.constant 0 : index
    %0 = vector.load %arg3[%c0, %c0_0] : memref<8x1xf32, #tpu.memory_space<vmem>>, vector<8x1xf32>
    %1 = vector.shape_cast %0 : vector<8x1xf32> to vector<8x1xf32>
    %2 = vector.broadcast %1 : vector<8x1xf32> to vector<8x286xf32>
    %c0_1 = arith.constant 0 : index
    %c0_2 = arith.constant 0 : index
    %c0_3 = arith.constant 0 : index
    %3 = vector.load %arg2[%c0_1, %c0_2, %c0_3] : memref<9x8x8xf32, #tpu.memory_space<vmem>>, vector<1x8x8xf32>
    %4 = vector.shape_cast %3 : vector<1x8x8xf32> to vector<8x8xf32>
    %c0_4 = arith.constant 0 : index
    %c0_5 = arith.constant 0 : index
    %c0_6 = arith.constant 0 : index
    %5 = vector.load %arg1[%c0_4, %c0_5, %c0_6] : memref<1x8x324xf32, #tpu.memory_space<vmem>>, vector<1x8x286xf32>
    %6 = vector.shape_cast %5 : vector<1x8x286xf32> to vector<8x286xf32>
    %cst = arith.constant dense<0.000000e+00> : vector<8x286xf32>
    %7 = tpu.matmul %4, %6, %cst {dimension_numbers = #tpu.dot_dimension_numbers<[1], [0], [0], [1], [0, 0, 1, 1], [], []>, precision = #tpu.contract_precision<fp32>} : vector<8x8xf32>, vector<8x286xf32>, vector<8x286xf32> -> vector<8x286xf32>
    %8 = arith.addf %2, %7 : vector<8x286xf32>
    %c1 = arith.constant 1 : index
    %c0_7 = arith.constant 0 : index
    %c0_8 = arith.constant 0 : index
    %9 = vector.load %arg2[%c1, %c0_7, %c0_8] : memref<9x8x8xf32, #tpu.memory_space<vmem>>, vector<1x8x8xf32>
    %10 = vector.shape_cast %9 : vector<1x8x8xf32> to vector<8x8xf32>
    %c0_9 = arith.constant 0 : index
    %c0_10 = arith.constant 0 : index
    %c1_11 = arith.constant 1 : index
    %11 = vector.load %arg1[%c0_9, %c0_10, %c1_11] : memref<1x8x324xf32, #tpu.memory_space<vmem>>, vector<1x8x286xf32>
    %12 = vector.shape_cast %11 : vector<1x8x286xf32> to vector<8x286xf32>
    %cst_12 = arith.constant dense<0.000000e+00> : vector<8x286xf32>
    %13 = tpu.matmul %10, %12, %cst_12 {dimension_numbers = #tpu.dot_dimension_numbers<[1], [0], [0], [1], [0, 0, 1, 1], [], []>, precision = #tpu.contract_precision<fp32>} : vector<8x8xf32>, vector<8x286xf32>, vector<8x286xf32> -> vector<8x286xf32>
    %14 = arith.addf %8, %13 : vector<8x286xf32>
    %c2 = arith.constant 2 : index
    %c0_13 = arith.constant 0 : index
    %c0_14 = arith.constant 0 : index
    %15 = vector.load %arg2[%c2, %c0_13, %c0_14] : memref<9x8x8xf32, #tpu.memory_space<vmem>>, vector<1x8x8xf32>
    %16 = vector.shape_cast %15 : vector<1x8x8xf32> to vector<8x8xf32>
    %c0_15 = arith.constant 0 : index
    %c0_16 = arith.constant 0 : index
    %c2_17 = arith.constant 2 : index
    %17 = vector.load %arg1[%c0_15, %c0_16, %c2_17] : memref<1x8x324xf32, #tpu.memory_space<vmem>>, vector<1x8x286xf32>
    %18 = vector.shape_cast %17 : vector<1x8x286xf32> to vector<8x286xf32>
    %cst_18 = arith.constant dense<0.000000e+00> : vector<8x286xf32>
    %19 = tpu.matmul %16, %18, %cst_18 {dimension_numbers = #tpu.dot_dimension_numbers<[1], [0], [0], [1], [0, 0, 1, 1], [], []>, precision = #tpu.contract_precision<fp32>} : vector<8x8xf32>, vector<8x286xf32>, vector<8x286xf32> -> vector<8x286xf32>
    %20 = arith.addf %14, %19 : vector<8x286xf32>
    %c3 = arith.constant 3 : index
    %c0_19 = arith.constant 0 : index
    %c0_20 = arith.constant 0 : index
    %21 = vector.load %arg2[%c3, %c0_19, %c0_20] : memref<9x8x8xf32, #tpu.memory_space<vmem>>, vector<1x8x8xf32>
    %22 = vector.shape_cast %21 : vector<1x8x8xf32> to vector<8x8xf32>
    %c0_21 = arith.constant 0 : index
    %c0_22 = arith.constant 0 : index
    %c18 = arith.constant 18 : index
    %23 = vector.load %arg1[%c0_21, %c0_22, %c18] : memref<1x8x324xf32, #tpu.memory_space<vmem>>, vector<1x8x286xf32>
    %24 = vector.shape_cast %23 : vector<1x8x286xf32> to vector<8x286xf32>
    %cst_23 = arith.constant dense<0.000000e+00> : vector<8x286xf32>
    %25 = tpu.matmul %22, %24, %cst_23 {dimension_numbers = #tpu.dot_dimension_numbers<[1], [0], [0], [1], [0, 0, 1, 1], [], []>, precision = #tpu.contract_precision<fp32>} : vector<8x8xf32>, vector<8x286xf32>, vector<8x286xf32> -> vector<8x286xf32>
    %26 = arith.addf %20, %25 : vector<8x286xf32>
    %c4 = arith.constant 4 : index
    %c0_24 = arith.constant 0 : index
    %c0_25 = arith.constant 0 : index
    %27 = vector.load %arg2[%c4, %c0_24, %c0_25] : memref<9x8x8xf32, #tpu.memory_space<vmem>>, vector<1x8x8xf32>
    %28 = vector.shape_cast %27 : vector<1x8x8xf32> to vector<8x8xf32>
    %c0_26 = arith.constant 0 : index
    %c0_27 = arith.constant 0 : index
    %c19 = arith.constant 19 : index
    %29 = vector.load %arg1[%c0_26, %c0_27, %c19] : memref<1x8x324xf32, #tpu.memory_space<vmem>>, vector<1x8x286xf32>
    %30 = vector.shape_cast %29 : vector<1x8x286xf32> to vector<8x286xf32>
    %cst_28 = arith.constant dense<0.000000e+00> : vector<8x286xf32>
    %31 = tpu.matmul %28, %30, %cst_28 {dimension_numbers = #tpu.dot_dimension_numbers<[1], [0], [0], [1], [0, 0, 1, 1], [], []>, precision = #tpu.contract_precision<fp32>} : vector<8x8xf32>, vector<8x286xf32>, vector<8x286xf32> -> vector<8x286xf32>
    %32 = arith.addf %26, %31 : vector<8x286xf32>
    %c5 = arith.constant 5 : index
    %c0_29 = arith.constant 0 : index
    %c0_30 = arith.constant 0 : index
    %33 = vector.load %arg2[%c5, %c0_29, %c0_30] : memref<9x8x8xf32, #tpu.memory_space<vmem>>, vector<1x8x8xf32>
    %34 = vector.shape_cast %33 : vector<1x8x8xf32> to vector<8x8xf32>
    %c0_31 = arith.constant 0 : index
    %c0_32 = arith.constant 0 : index
    %c20 = arith.constant 20 : index
    %35 = vector.load %arg1[%c0_31, %c0_32, %c20] : memref<1x8x324xf32, #tpu.memory_space<vmem>>, vector<1x8x286xf32>
    %36 = vector.shape_cast %35 : vector<1x8x286xf32> to vector<8x286xf32>
    %cst_33 = arith.constant dense<0.000000e+00> : vector<8x286xf32>
    %37 = tpu.matmul %34, %36, %cst_33 {dimension_numbers = #tpu.dot_dimension_numbers<[1], [0], [0], [1], [0, 0, 1, 1], [], []>, precision = #tpu.contract_precision<fp32>} : vector<8x8xf32>, vector<8x286xf32>, vector<8x286xf32> -> vector<8x286xf32>
    %38 = arith.addf %32, %37 : vector<8x286xf32>
    %c6 = arith.constant 6 : index
    %c0_34 = arith.constant 0 : index
    %c0_35 = arith.constant 0 : index
    %39 = vector.load %arg2[%c6, %c0_34, %c0_35] : memref<9x8x8xf32, #tpu.memory_space<vmem>>, vector<1x8x8xf32>
    %40 = vector.shape_cast %39 : vector<1x8x8xf32> to vector<8x8xf32>
    %c0_36 = arith.constant 0 : index
    %c0_37 = arith.constant 0 : index
    %c36 = arith.constant 36 : index
    %41 = vector.load %arg1[%c0_36, %c0_37, %c36] : memref<1x8x324xf32, #tpu.memory_space<vmem>>, vector<1x8x286xf32>
    %42 = vector.shape_cast %41 : vector<1x8x286xf32> to vector<8x286xf32>
    %cst_38 = arith.constant dense<0.000000e+00> : vector<8x286xf32>
    %43 = tpu.matmul %40, %42, %cst_38 {dimension_numbers = #tpu.dot_dimension_numbers<[1], [0], [0], [1], [0, 0, 1, 1], [], []>, precision = #tpu.contract_precision<fp32>} : vector<8x8xf32>, vector<8x286xf32>, vector<8x286xf32> -> vector<8x286xf32>
    %44 = arith.addf %38, %43 : vector<8x286xf32>
    %c7 = arith.constant 7 : index
    %c0_39 = arith.constant 0 : index
    %c0_40 = arith.constant 0 : index
    %45 = vector.load %arg2[%c7, %c0_39, %c0_40] : memref<9x8x8xf32, #tpu.memory_space<vmem>>, vector<1x8x8xf32>
    %46 = vector.shape_cast %45 : vector<1x8x8xf32> to vector<8x8xf32>
    %c0_41 = arith.constant 0 : index
    %c0_42 = arith.constant 0 : index
    %c37 = arith.constant 37 : index
    %47 = vector.load %arg1[%c0_41, %c0_42, %c37] : memref<1x8x324xf32, #tpu.memory_space<vmem>>, vector<1x8x286xf32>
    %48 = vector.shape_cast %47 : vector<1x8x286xf32> to vector<8x286xf32>
    %cst_43 = arith.constant dense<0.000000e+00> : vector<8x286xf32>
    %49 = tpu.matmul %46, %48, %cst_43 {dimension_numbers = #tpu.dot_dimension_numbers<[1], [0], [0], [1], [0, 0, 1, 1], [], []>, precision = #tpu.contract_precision<fp32>} : vector<8x8xf32>, vector<8x286xf32>, vector<8x286xf32> -> vector<8x286xf32>
    %50 = arith.addf %44, %49 : vector<8x286xf32>
    %c8 = arith.constant 8 : index
    %c0_44 = arith.constant 0 : index
    %c0_45 = arith.constant 0 : index
    %51 = vector.load %arg2[%c8, %c0_44, %c0_45] : memref<9x8x8xf32, #tpu.memory_space<vmem>>, vector<1x8x8xf32>
    %52 = vector.shape_cast %51 : vector<1x8x8xf32> to vector<8x8xf32>
    %c0_46 = arith.constant 0 : index
    %c0_47 = arith.constant 0 : index
    %c38 = arith.constant 38 : index
    %53 = vector.load %arg1[%c0_46, %c0_47, %c38] : memref<1x8x324xf32, #tpu.memory_space<vmem>>, vector<1x8x286xf32>
    %54 = vector.shape_cast %53 : vector<1x8x286xf32> to vector<8x286xf32>
    %cst_48 = arith.constant dense<0.000000e+00> : vector<8x286xf32>
    %55 = tpu.matmul %52, %54, %cst_48 {dimension_numbers = #tpu.dot_dimension_numbers<[1], [0], [0], [1], [0, 0, 1, 1], [], []>, precision = #tpu.contract_precision<fp32>} : vector<8x8xf32>, vector<8x286xf32>, vector<8x286xf32> -> vector<8x286xf32>
    %56 = arith.addf %50, %55 : vector<8x286xf32>
    %cst_49 = arith.constant 0.00999999977 : f32
    %57 = vector.broadcast %cst_49 : f32 to vector<8x286xf32>
    %58 = arith.mulf %57, %56 : vector<8x286xf32>
    %59 = arith.maximumf %56, %58 : vector<8x286xf32>
    %c0_50 = arith.constant 0 : index
    %c0_51 = arith.constant 0 : index
    %60 = vector.load %arg6[%c0_50, %c0_51] : memref<1x286xf32, #tpu.memory_space<vmem>>, vector<1x286xf32>
    %61 = vector.broadcast %60 : vector<1x286xf32> to vector<8x286xf32>
    %62 = arith.mulf %59, %61 : vector<8x286xf32>
    %cst_52 = arith.constant 0.000000e+00 : f32
    %63 = vector.broadcast %cst_52 : f32 to vector<8x19xf32>
    %c0_53 = arith.constant 0 : index
    %c0_54 = arith.constant 0 : index
    %64 = vector.load %arg8[%c0_53, %c0_54] : memref<8x422xf32, #tpu.memory_space<vmem>>, vector<8x19xf32>
    tpu.vector_store %arg8[%c0_53, %c0_54], %63 {strides = array<i32>} : memref<8x422xf32, #tpu.memory_space<vmem>>, vector<8x19xf32>,
    %cst_55 = arith.constant 0.000000e+00 : f32
    %65 = vector.broadcast %cst_55 : f32 to vector<8x117xf32>
    %c0_56 = arith.constant 0 : index
    %c305 = arith.constant 305 : index
    %66 = vector.load %arg8[%c0_56, %c305] : memref<8x422xf32, #tpu.memory_space<vmem>>, vector<8x117xf32>
    tpu.vector_store %arg8[%c0_56, %c305], %65 {strides = array<i32>} : memref<8x422xf32, #tpu.memory_space<vmem>>, vector<8x117xf32>,
    %c0_57 = arith.constant 0 : index
    %c19_58 = arith.constant 19 : index
    %67 = vector.load %arg8[%c0_57, %c19_58] : memref<8x422xf32, #tpu.memory_space<vmem>>, vector<8x286xf32>
    tpu.vector_store %arg8[%c0_57, %c19_58], %62 {strides = array<i32>} : memref<8x422xf32, #tpu.memory_space<vmem>>, vector<8x286xf32>,
    %c0_59 = arith.constant 0 : index
    %c0_60 = arith.constant 0 : index
    %68 = vector.load %arg5[%c0_59, %c0_60] : memref<8x1xf32, #tpu.memory_space<vmem>>, vector<8x1xf32>
    %69 = vector.shape_cast %68 : vector<8x1xf32> to vector<8x1xf32>
    %70 = vector.broadcast %69 : vector<8x1xf32> to vector<8x384xf32>
    %c0_61 = arith.constant 0 : index
    %c0_62 = arith.constant 0 : index
    %c0_63 = arith.constant 0 : index
    %71 = vector.load %arg4[%c0_61, %c0_62, %c0_63] : memref<9x8x8xf32, #tpu.memory_space<vmem>>, vector<1x8x8xf32>
    %72 = vector.shape_cast %71 : vector<1x8x8xf32> to vector<8x8xf32>
    %c0_64 = arith.constant 0 : index
    %c0_65 = arith.constant 0 : index
    %73 = vector.load %arg8[%c0_64, %c0_65] : memref<8x422xf32, #tpu.memory_space<vmem>>, vector<8x384xf32>
    %cst_66 = arith.constant dense<0.000000e+00> : vector<8x384xf32>
    %74 = tpu.matmul %72, %73, %cst_66 {dimension_numbers = #tpu.dot_dimension_numbers<[1], [0], [0], [1], [0, 0, 1, 1], [], []>, precision = #tpu.contract_precision<fp32>} : vector<8x8xf32>, vector<8x384xf32>, vector<8x384xf32> -> vector<8x384xf32>
    %75 = arith.addf %70, %74 : vector<8x384xf32>
    %c1_67 = arith.constant 1 : index
    %c0_68 = arith.constant 0 : index
    %c0_69 = arith.constant 0 : index
    %76 = vector.load %arg4[%c1_67, %c0_68, %c0_69] : memref<9x8x8xf32, #tpu.memory_space<vmem>>, vector<1x8x8xf32>
    %77 = vector.shape_cast %76 : vector<1x8x8xf32> to vector<8x8xf32>
    %c0_70 = arith.constant 0 : index
    %c1_71 = arith.constant 1 : index
    %78 = vector.load %arg8[%c0_70, %c1_71] : memref<8x422xf32, #tpu.memory_space<vmem>>, vector<8x384xf32>
    %cst_72 = arith.constant dense<0.000000e+00> : vector<8x384xf32>
    %79 = tpu.matmul %77, %78, %cst_72 {dimension_numbers = #tpu.dot_dimension_numbers<[1], [0], [0], [1], [0, 0, 1, 1], [], []>, precision = #tpu.contract_precision<fp32>} : vector<8x8xf32>, vector<8x384xf32>, vector<8x384xf32> -> vector<8x384xf32>
    %80 = arith.addf %75, %79 : vector<8x384xf32>
    %c2_73 = arith.constant 2 : index
    %c0_74 = arith.constant 0 : index
    %c0_75 = arith.constant 0 : index
    %81 = vector.load %arg4[%c2_73, %c0_74, %c0_75] : memref<9x8x8xf32, #tpu.memory_space<vmem>>, vector<1x8x8xf32>
    %82 = vector.shape_cast %81 : vector<1x8x8xf32> to vector<8x8xf32>
    %c0_76 = arith.constant 0 : index
    %c2_77 = arith.constant 2 : index
    %83 = vector.load %arg8[%c0_76, %c2_77] : memref<8x422xf32, #tpu.memory_space<vmem>>, vector<8x384xf32>
    %cst_78 = arith.constant dense<0.000000e+00> : vector<8x384xf32>
    %84 = tpu.matmul %82, %83, %cst_78 {dimension_numbers = #tpu.dot_dimension_numbers<[1], [0], [0], [1], [0, 0, 1, 1], [], []>, precision = #tpu.contract_precision<fp32>} : vector<8x8xf32>, vector<8x384xf32>, vector<8x384xf32> -> vector<8x384xf32>
    %85 = arith.addf %80, %84 : vector<8x384xf32>
    %c3_79 = arith.constant 3 : index
    %c0_80 = arith.constant 0 : index
    %c0_81 = arith.constant 0 : index
    %86 = vector.load %arg4[%c3_79, %c0_80, %c0_81] : memref<9x8x8xf32, #tpu.memory_space<vmem>>, vector<1x8x8xf32>
    %87 = vector.shape_cast %86 : vector<1x8x8xf32> to vector<8x8xf32>
    %c0_82 = arith.constant 0 : index
    %c18_83 = arith.constant 18 : index
    %88 = vector.load %arg8[%c0_82, %c18_83] : memref<8x422xf32, #tpu.memory_space<vmem>>, vector<8x384xf32>
    %cst_84 = arith.constant dense<0.000000e+00> : vector<8x384xf32>
    %89 = tpu.matmul %87, %88, %cst_84 {dimension_numbers = #tpu.dot_dimension_numbers<[1], [0], [0], [1], [0, 0, 1, 1], [], []>, precision = #tpu.contract_precision<fp32>} : vector<8x8xf32>, vector<8x384xf32>, vector<8x384xf32> -> vector<8x384xf32>
    %90 = arith.addf %85, %89 : vector<8x384xf32>
    %c4_85 = arith.constant 4 : index
    %c0_86 = arith.constant 0 : index
    %c0_87 = arith.constant 0 : index
    %91 = vector.load %arg4[%c4_85, %c0_86, %c0_87] : memref<9x8x8xf32, #tpu.memory_space<vmem>>, vector<1x8x8xf32>
    %92 = vector.shape_cast %91 : vector<1x8x8xf32> to vector<8x8xf32>
    %c0_88 = arith.constant 0 : index
    %c19_89 = arith.constant 19 : index
    %93 = vector.load %arg8[%c0_88, %c19_89] : memref<8x422xf32, #tpu.memory_space<vmem>>, vector<8x384xf32>
    %cst_90 = arith.constant dense<0.000000e+00> : vector<8x384xf32>
    %94 = tpu.matmul %92, %93, %cst_90 {dimension_numbers = #tpu.dot_dimension_numbers<[1], [0], [0], [1], [0, 0, 1, 1], [], []>, precision = #tpu.contract_precision<fp32>} : vector<8x8xf32>, vector<8x384xf32>, vector<8x384xf32> -> vector<8x384xf32>
    %95 = arith.addf %90, %94 : vector<8x384xf32>
    %c5_91 = arith.constant 5 : index
    %c0_92 = arith.constant 0 : index
    %c0_93 = arith.constant 0 : index
    %96 = vector.load %arg4[%c5_91, %c0_92, %c0_93] : memref<9x8x8xf32, #tpu.memory_space<vmem>>, vector<1x8x8xf32>
    %97 = vector.shape_cast %96 : vector<1x8x8xf32> to vector<8x8xf32>
    %c0_94 = arith.constant 0 : index
    %c20_95 = arith.constant 20 : index
    %98 = vector.load %arg8[%c0_94, %c20_95] : memref<8x422xf32, #tpu.memory_space<vmem>>, vector<8x384xf32>
    %cst_96 = arith.constant dense<0.000000e+00> : vector<8x384xf32>
    %99 = tpu.matmul %97, %98, %cst_96 {dimension_numbers = #tpu.dot_dimension_numbers<[1], [0], [0], [1], [0, 0, 1, 1], [], []>, precision = #tpu.contract_precision<fp32>} : vector<8x8xf32>, vector<8x384xf32>, vector<8x384xf32> -> vector<8x384xf32>
    %100 = arith.addf %95, %99 : vector<8x384xf32>
    %c6_97 = arith.constant 6 : index
    %c0_98 = arith.constant 0 : index
    %c0_99 = arith.constant 0 : index
    %101 = vector.load %arg4[%c6_97, %c0_98, %c0_99] : memref<9x8x8xf32, #tpu.memory_space<vmem>>, vector<1x8x8xf32>
    %102 = vector.shape_cast %101 : vector<1x8x8xf32> to vector<8x8xf32>
    %c0_100 = arith.constant 0 : index
    %c36_101 = arith.constant 36 : index
    %103 = vector.load %arg8[%c0_100, %c36_101] : memref<8x422xf32, #tpu.memory_space<vmem>>, vector<8x384xf32>
    %cst_102 = arith.constant dense<0.000000e+00> : vector<8x384xf32>
    %104 = tpu.matmul %102, %103, %cst_102 {dimension_numbers = #tpu.dot_dimension_numbers<[1], [0], [0], [1], [0, 0, 1, 1], [], []>, precision = #tpu.contract_precision<fp32>} : vector<8x8xf32>, vector<8x384xf32>, vector<8x384xf32> -> vector<8x384xf32>
    %105 = arith.addf %100, %104 : vector<8x384xf32>
    %c7_103 = arith.constant 7 : index
    %c0_104 = arith.constant 0 : index
    %c0_105 = arith.constant 0 : index
    %106 = vector.load %arg4[%c7_103, %c0_104, %c0_105] : memref<9x8x8xf32, #tpu.memory_space<vmem>>, vector<1x8x8xf32>
    %107 = vector.shape_cast %106 : vector<1x8x8xf32> to vector<8x8xf32>
    %c0_106 = arith.constant 0 : index
    %c37_107 = arith.constant 37 : index
    %108 = vector.load %arg8[%c0_106, %c37_107] : memref<8x422xf32, #tpu.memory_space<vmem>>, vector<8x384xf32>
    %cst_108 = arith.constant dense<0.000000e+00> : vector<8x384xf32>
    %109 = tpu.matmul %107, %108, %cst_108 {dimension_numbers = #tpu.dot_dimension_numbers<[1], [0], [0], [1], [0, 0, 1, 1], [], []>, precision = #tpu.contract_precision<fp32>} : vector<8x8xf32>, vector<8x384xf32>, vector<8x384xf32> -> vector<8x384xf32>
    %110 = arith.addf %105, %109 : vector<8x384xf32>
    %c8_109 = arith.constant 8 : index
    %c0_110 = arith.constant 0 : index
    %c0_111 = arith.constant 0 : index
    %111 = vector.load %arg4[%c8_109, %c0_110, %c0_111] : memref<9x8x8xf32, #tpu.memory_space<vmem>>, vector<1x8x8xf32>
    %112 = vector.shape_cast %111 : vector<1x8x8xf32> to vector<8x8xf32>
    %c0_112 = arith.constant 0 : index
    %c38_113 = arith.constant 38 : index
    %113 = vector.load %arg8[%c0_112, %c38_113] : memref<8x422xf32, #tpu.memory_space<vmem>>, vector<8x384xf32>
    %cst_114 = arith.constant dense<0.000000e+00> : vector<8x384xf32>
    %114 = tpu.matmul %112, %113, %cst_114 {dimension_numbers = #tpu.dot_dimension_numbers<[1], [0], [0], [1], [0, 0, 1, 1], [], []>, precision = #tpu.contract_precision<fp32>} : vector<8x8xf32>, vector<8x384xf32>, vector<8x384xf32> -> vector<8x384xf32>
    %115 = arith.addf %110, %114 : vector<8x384xf32>
    %c0_115 = arith.constant 0 : index
    %c0_116 = arith.constant 0 : index
    %c0_117 = arith.constant 0 : index
    %116 = vector.load %arg7[%c0_115, %c0_116, %c0_117] : memref<1x8x384xf32, #tpu.memory_space<vmem>>, vector<1x8x384xf32>
    %117 = vector.shape_cast %116 : vector<1x8x384xf32> to vector<8x384xf32>
    %118 = vector.shape_cast %115 : vector<8x384xf32> to vector<1x8x384xf32>
    tpu.vector_store %arg7[%c0_115, %c0_116, %c0_117], %118 {strides = array<i32>} : memref<1x8x384xf32, #tpu.memory_space<vmem>>, vector<1x8x384xf32>,
    return
  }
  func.func @transform_0(%arg0: i32) -> (i32, i32, i32) {
    %c0_i32 = arith.constant 0 : i32
    %c0_i32_0 = arith.constant 0 : i32
    %c0_i32_1 = arith.constant 0 : i32
    return %arg0, %c0_i32, %c0_i32_0 : i32, i32, i32
  }
  func.func @transform_1(%arg0: i32) -> (i32, i32, i32) {
    %c0_i32 = arith.constant 0 : i32
    %c0_i32_0 = arith.constant 0 : i32
    %c0_i32_1 = arith.constant 0 : i32
    %c0_i32_2 = arith.constant 0 : i32
    return %c0_i32, %c0_i32_0, %c0_i32_1 : i32, i32, i32
  }
  func.func @transform_2(%arg0: i32) -> (i32, i32) {
    %c0_i32 = arith.constant 0 : i32
    %c0_i32_0 = arith.constant 0 : i32
    %c0_i32_1 = arith.constant 0 : i32
    return %c0_i32, %c0_i32_0 : i32, i32
  }
  func.func @transform_3(%arg0: i32) -> (i32, i32, i32) {
    %c0_i32 = arith.constant 0 : i32
    %c0_i32_0 = arith.constant 0 : i32
    %c0_i32_1 = arith.constant 0 : i32
    %c0_i32_2 = arith.constant 0 : i32
    return %c0_i32, %c0_i32_0, %c0_i32_1 : i32, i32, i32
  }
  func.func @transform_4(%arg0: i32) -> (i32, i32) {
    %c0_i32 = arith.constant 0 : i32
    %c0_i32_0 = arith.constant 0 : i32
    %c0_i32_1 = arith.constant 0 : i32
    return %c0_i32, %c0_i32_0 : i32, i32
  }
  func.func @transform_5(%arg0: i32) -> (i32, i32) {
    %c0_i32 = arith.constant 0 : i32
    %c0_i32_0 = arith.constant 0 : i32
    %c0_i32_1 = arith.constant 0 : i32
    return %c0_i32, %c0_i32_0 : i32, i32
  }
  func.func @transform_6(%arg0: i32) -> (i32, i32, i32) {
    %c0_i32 = arith.constant 0 : i32
    %c0_i32_0 = arith.constant 0 : i32
    %c0_i32_1 = arith.constant 0 : i32
    return %arg0, %c0_i32, %c0_i32_0 : i32, i32, i32
  }
}

</mosaic_0001>

<bundles_post_ra>
// kernel: tpu_custom_call.1
= control target key start
LH: loop header
LB: loop body
LE: loop exit
PB: predicated region body
PF: predicated region fallthrough
CT: control target
= control target key end

     0   :  { %11 = vsyncpa [#allocation4], 0  ;;  %s19849_s0 = inlined_call_operand.vmem [shape: f32[2,8,324], index: 0, kind: input, shape index: {}]   ;;  %s19850_s1 = inlined_call_operand.vmem [shape: f32[9,8,8], index: 1, kind: input, shape index: {}]   ;;  %s19851_s2 = inlined_call_operand.vmem [shape: f32[8,1], index: 2, kind: input, shape index: {}]   ;;  %s19852_s3 = inlined_call_operand.vmem [shape: f32[9,8,8], index: 3, kind: input, shape index: {}]   ;;  %s19853_s4 = inlined_call_operand.vmem [shape: f32[8,1], index: 4, kind: input, shape index: {}]   ;;  %s19854_s5 = inlined_call_operand.vmem [shape: f32[1,286], index: 5, kind: input, shape index: {}]   ;;  %s19855_s6 = inlined_call_operand.hbm [shape: f32[2,8,384], index: 6, kind: output, shape index: {}]  }
   0x1   :  { %13 = vsyncpa [#allocation4 + $0x1], 0  ;;  %s18534_s21 = smov 0   ;;  %s18536_s22 = smov 0  }
   0x2   :  { %s18538_s23 = smov 0   ;;  %s18540_s24 = smov 0  }
   0x3 LB: > { %s18555_s25 = sadd.s32 4294967295, %s18484_s24   ;;  %s17156_s26 = sadd.s32 4294967294, %s18484_s24   ;;  %s18484_s24 = sphi %s18540_s24, %s19861_s24   ;;  %s18480_s23 = sphi %s18538_s23, %s19860_s23   ;;  %s18476_s22 = sphi %s18536_s22, %s19859_s22   ;;  %s18472_s21 = sphi %s18534_s21, %s19858_s21  }
   0x4   : > { %s18559_s27 = sadd.s32 1, %s18484_s24   ;;  %s157_s28 = sadd.s32 1, %s18480_s23 }
   0x5   : > { %s154_s29 = ssub.s32 %s18484_s24, %s18559_s27  ;;  %p167_p0 = scmp.ne.s32.totalorder %s18480_s23, %s18476_s22 }
   0x6   : > { %p155_p1 = scmp.eq.s32.totalorder %s154_s29, 0  ;;  %p168_p2 = scmp.eq.s32.totalorder %s18555_s25, 1 }
   0x7   : > { %p173_p3 = scmp.ne.s32.totalorder %s18476_s22, %s18472_s21  ;;  %p174_p4 = scmp.eq.s32.totalorder %s17156_s26, 1 }
   0x8   : > { %s18570_s30 = scalar_select %p155_p1, %s18480_s23, %s157_s28  }
   0x9   : > { %p18572_p5 = por %p168_p2, %p167_p0  ;;  %p18576_p6 = por %p174_p4, %p173_p3 }
   0xa   : > { %p17159_p7 = scmp.ge.s32.totalorder %s18484_s24, 1  ;;  %p215_p8 = scmp.lt.s32.totalorder %s18484_s24, 3 }
   0xc   : > { %p216_p9 = pnand %p17159_p7, %p215_p8 }
   0xd   : > { %p245_p10 = scmp.lt.s32.totalorder (!%p216_p9), %s18555_s25, 1  ;;  %v256_v0 = vld [vmem:[%s19850_s1] sm:$0xff] (!%p216_p9)  ;;  %vm260_vm0 = vcmask (!%p216_p9), 64512   ;;  %v18486_v1 = vmov (!%p216_p9), 0.0   ;;  %vm18487_vm1 = vmmov (!%p216_p9), 0   ;;  %s18488_s16 = smov (!%p216_p9), 127  }
   0xe   : > { %219 = sbr.rel (%p216_p9) target bundleno = 1602 (0x642), region = 44  ;;  %17396 = vmatprep.subr.mxu1 (!%p216_p9), %v18486_v1  ;;  %17398 = vmatprep.mubr.msk.f32.mxu1 (!%p216_p9), %vm18487_vm1, %v18486_v1  ;;  %v262_v2 = vsel (!%p216_p9), %vm260_vm0, %v256_v0, 0  ;;  %s18489_s17 = smov (!%p216_p9), 126   ;;  %v17161_v26 = vld [vmem:[%s19850_s1 + $0x8] sm:$0xff] (!%p216_p9)  ;;  %vm1189_vm2 = vcmask (!%p216_p9), 1039360   ;;  %vm2120_vm3 = vcmask (!%p216_p9), 1031168  }
   0xf   : > { %v18591_v3 = vand.u32 (!%p216_p9), 4294901760, %v262_v2  ;;  %330 = vmatprep.mubr.f32.mxu0 (!%p216_p9), %v18486_v1  ;;  %s18490_s18 = smov (!%p216_p9), 110   ;;  %s18491_s19 = smov (!%p216_p9), 109   ;;  %v1196_v27 = vsel (!%p216_p9), %vm260_vm0, %v17161_v26, 0  ;;  %v17162_v56 = vld [vmem:[%s19850_s1 + $0x10] sm:$0xff] (!%p216_p9)  ;;  %vm3051_vm4 = vcmask (!%p216_p9), 900096  }
  0x10   : > { %s18492_s20 = smov (!%p216_p9), 108   ;;  %v18697_v28 = vand.u32 (!%p216_p9), 4294901760, %v1196_v27  ;;  %s18493_s29 = smov (!%p216_p9), 92   ;;  %v2127_v59 = vsel (!%p216_p9), %vm260_vm0, %v17162_v56, 0  ;;  %vm3982_vm5 = vcmask (!%p216_p9), 891904   ;;  %vm4913_vm6 = vcmask (!%p216_p9), 883712  }
  0x11   : > { %v332_v4 = vsub.f32 (!%p216_p9), %v262_v2, %v18591_v3  ;;  %v18753_v62 = vand.u32 (!%p216_p9), 4294901760, %v2127_v59  ;;  %s18495_s14 = smov (!%p216_p9), 90   ;;  %vm5844_vm7 = vcmask (!%p216_p9), 752640   ;;  %vm6775_vm8 = vcmask (!%p216_p9), 744448  }
  0x12   : > { %v1266_v29 = vsub.f32 (!%p216_p9), %v1196_v27, %v18697_v28  ;;  %vm7706_vm9 = vcmask (!%p216_p9), 736256   ;;  %vm8655_vm10 = vcmask (!%p216_p9), 154624   ;;  %vm8657_vm11 = vcmask (!%p216_p9), 1047944  }
  0x13   : > { %v18598_v5 = vand.u32 (!%p216_p9), 4294901760, %v332_v4  ;;  %v2197_v2 = vsub.f32 (!%p216_p9), %v2127_v59, %v18753_v62  ;;  %8656 = vst.msk [vmem:[#allocation2] sm:$0xff] (!%p216_p9), %vm8655_vm10, %v18486_v1  ;;  %vm8659_vm12 = vcmask (!%p216_p9), 310272   ;;  %vm8675_vm13 = vcmask (!%p216_p9), 1047704  }
  0x14   : > { %v18706_v30 = vand.u32 (!%p216_p9), 4294901760, %v1266_v29  ;;  %8658 = vst.msk [vmem:[#allocation2 + $0x10] sm:$0xff] (!%p216_p9), %vm8657_vm11, %v18486_v1  ;;  %vm8678_vm14 = vcmask (!%p216_p9), 400384  }
  0x15   : > { %s246_s11 = scalar_select %p245_p10, %s18555_s25, 1  ;;  %v334_v11 = vsub.f32 %v332_v4, %v18598_v5  ;;  %8660 = vst.msk [vmem:[#allocation2 + $0x18] sm:$0xff] %vm8659_vm12, %v18486_v1 }
  0x16   : > { %v1268_v33 = vsub.f32 %v1266_v29, %v18706_v30 }
  0x17   : > { %s18367_s12 = smul.u32 24, %s246_s11  ;;  %v335_v13 = vand.u32 4294901760, %v334_v11  ;;  %s18494_s11 = smov 91  }
  0x18   : > { %v1269_v38 = vand.u32 4294901760, %v1268_v33 }
  0x19   : > { %s249_s15 = scalar_lea.vmem %s19849_s0, %s18367_s12 }
  0x1a   : > { %v18600_v6 = vld [vmem:[%s249_s15 + $0x8] sm:$0xff]  ;;  %v18602_v7 = vld [vmem:[%s249_s15] sm:$0xff]  ;;  %v18604_v8 = vld [vmem:[%s249_s15 + $0x10] sm:$0xff]  ;;  %s18497_s15 = smov 19  }
  0x1b   : > { %1185 = vrot.lane.b32.xlu0 %v18600_v6, %s18488_s16  ;;  %1183 = vrot.lane.b32.xlu1 %v18602_v7, %s18488_s16  ;;  %v18611_v9 = vand.u32 4294901760, %v18604_v8  ;;  %v18614_v10 = vand.u32 4294901760, %v18600_v6  ;;  %v18618_v12 = vand.u32 4294901760, %v18602_v7 }
  0x1d   : > { %17397 = vmatpush3.msra.mxu1 %v18611_v9  ;;  %265 = vmatprep.subr.mxu0 %v18614_v10  ;;  %v807_v14 = vsub.f32 %v18604_v8, %v18611_v9  ;;  %v343_v15 = vsub.f32 %v18600_v6, %v18614_v10  ;;  %v349_v16 = vsub.f32 %v18602_v7, %v18618_v12 }
  0x1e   : > { %267 = vmatpush1.msra.mxu0 %v18618_v12  ;;  %17401 = vmatprep.subr.mxu1 %v18486_v1 }
  0x1f   : > { %1187 = vrot.lane.b32.xlu0 %v18604_v8, %s18488_s16  ;;  %2116 = vrot.lane.b32.xlu1 %v18600_v6, %s18489_s17  ;;  %v808_v17 = vand.u32 4294901760, %v807_v14  ;;  %v344_v18 = vand.u32 4294901760, %v343_v15  ;;  %v350_v19 = vand.u32 4294901760, %v349_v16 }
  0x20   : > { %17399 = vmatmul.mubr.f32.vlgmr.msra.gmra.mrb[0].mxu1 %v335_v13  ;;  %336 = vmatmul.mubr.f32.vlgmr.msra.gmra.mrb[0].mxu0 %v335_v13 }
  0x21   : > { %v809_v20 = vsub.f32 %v807_v14, %v808_v17  ;;  %17403 = vmatprep.mubr.msk.f32.mxu1 %vm18487_vm1, %v18486_v1  ;;  %v345_v21 = vsub.f32 %v343_v15, %v344_v18  ;;  %v351_v22 = vsub.f32 %v349_v16, %v350_v19  ;;  %416 = vmatprep.mubr.f32.mxu0 %v18486_v1 }
  0x23   : > { %2118 = vrot.lane.b32.xlu0 %v18604_v8, %s18489_s17  ;;  %2114 = vrot.lane.b32.xlu1 %v18602_v7, %s18489_s17  ;;  %v810_v23 = vand.u32 4294901760, %v809_v20  ;;  %v346_v24 = vand.u32 4294901760, %v345_v21  ;;  %v352_v25 = vand.u32 4294901760, %v351_v22 }
  0x25   : > { %17402 = vmatpush3.msra.mxu1 %v810_v23  ;;  %347 = vmatprep.subr.mxu0 %v346_v24  ;;  %v17163_v23 = vld [vmem:[%s19850_s1 + $0x18] sm:$0xff] }
  0x26   : > { %353 = vmatpush1.msra.mxu0 %v352_v25  ;;  %17406 = vmatprep.subr.mxu1 %v18486_v1  ;;  %v3058_v26 = vsel %vm260_vm0, %v17163_v23, 0 }
  0x27   : > { %3047 = vrot.lane.b32.xlu0 %v18600_v6, %s18490_s18  ;;  %426 = vmatprep.subr.mxu0 %v343_v15 }
  0x28   : > { %17404 = vmatmul.mubr.f32.vlgmr.msra.gmra.mrb[0].mxu1 %v18591_v3  ;;  %418 = vmatmul.mubr.f32.vlgmr.msra.gmra.mrb[0].mxu0 %v18591_v3 }
  0x29   : > { %17407 = vmatpush3.msra.mxu1 %v807_v14  ;;  %17408 = vmatprep.mubr.msk.f32.mxu1 %vm18487_vm1, %v18486_v1 }
  0x2a   : > { %429 = vmatpush1.msra.mxu0 %v349_v16  ;;  %492 = vmatprep.mubr.f32.mxu0 %v18486_v1 }
  0x2b   : > { %3045 = vrot.lane.b32.xlu0 %v18602_v7, %s18490_s18  ;;  %3049 = vrot.lane.b32.xlu1 %v18604_v8, %s18490_s18 }
  0x2c   : > { %17411 = vmatprep.subr.mxu1 %v18486_v1  ;;  %502 = vmatprep.subr.mxu0 %v18614_v10 }
  0x2f   : > { %3978 = vrot.lane.b32.xlu1 %v18600_v6, %s18491_s19  ;;  %3980 = vrot.lane.b32.xlu0 %v18604_v8, %s18491_s19 }
  0x30   : > { %17409 = vmatmul.mubr.f32.vlgmr.msra.gmra.mrb[0].mxu1 %v332_v4  ;;  %495 = vmatmul.mubr.f32.vlgmr.msra.gmra.mrb[0].mxu0 %v332_v4 }
  0x31   : > { %17412 = vmatpush3.msra.mxu1 %v18611_v9  ;;  %17413 = vmatprep.mubr.msk.f32.mxu1 %vm18487_vm1, %v18486_v1 }
  0x32   : > { %504 = vmatpush1.msra.mxu0 %v18618_v12  ;;  %567 = vmatprep.mubr.f32.mxu0 %v18486_v1 }
  0x33   : > { %17416 = vmatprep.subr.mxu1 %v18486_v1  ;;  %580 = vmatprep.subr.mxu0 %v344_v18 }
  0x34   : > { %3976 = vrot.lane.b32.xlu1 %v18602_v7, %s18491_s19  ;;  %4909 = vrot.lane.b32.xlu0 %v18600_v6, %s18492_s20 }
  0x38   : > { %17414 = vmatmul.mubr.f32.vlgmr.msra.gmra.mrb[0].mxu1 %v18598_v5  ;;  %571 = vmatmul.mubr.f32.vlgmr.msra.gmra.mrb[0].mxu0 %v18598_v5 }
  0x39   : > { %17417 = vmatpush3.msra.mxu1 %v808_v17  ;;  %17418 = vmatprep.mubr.msk.f32.mxu1 %vm18487_vm1, %v18486_v1 }
  0x3a   : > { %584 = vmatpush1.msra.mxu0 %v350_v19  ;;  %647 = vmatprep.mubr.f32.mxu0 %v18486_v1 }
  0x3b   : > { %17421 = vmatprep.subr.mxu1 %v18486_v1  ;;  %656 = vmatprep.subr.mxu0 %v18614_v10 }
  0x3c   : > { %4911 = vrot.lane.b32.xlu1 %v18604_v8, %s18492_s20  ;;  %4907 = vrot.lane.b32.xlu0 %v18602_v7, %s18492_s20 }
  0x40   : > { %17419 = vmatmul.mubr.f32.vlgmr.msra.gmra.mrb[0].mxu1 %v18591_v3  ;;  %649 = vmatmul.mubr.f32.vlgmr.msra.gmra.mrb[0].mxu0 %v18591_v3 }
  0x41   : > { %17422 = vmatpush3.msra.mxu1 %v18611_v9  ;;  %17423 = vmatprep.mubr.msk.f32.mxu1 %vm18487_vm1, %v18486_v1  ;;  %v2198_v9 = vand.u32 4294901760, %v2197_v2 }
  0x42   : > { %658 = vmatpush1.msra.mxu0 %v18618_v12  ;;  %721 = vmatprep.mubr.f32.mxu0 %v18486_v1 }
  0x43   : > { %17426 = vmatprep.subr.mxu1 %v18486_v1  ;;  %5840 = vrot.lane.b32.xlu1 %v18600_v6, %s18493_s29  ;;  %v2199_v13 = vsub.f32 %v2197_v2, %v2198_v9 }
  0x44   : > { %5842 = vrot.lane.b32.xlu0 %v18604_v8, %s18493_s29 }
  0x45   : > { %v2200_v17 = vand.u32 4294901760, %v2199_v13 }
  0x47   : > { %5838 = vrot.lane.b32.xlu1 %v18602_v7, %s18493_s29 }
  0x48   : > { %17424 = vmatmul.mubr.f32.vlgmr.msra.gmra.mrb[0].mxu1 %v18591_v3  ;;  %723 = vmatmul.mubr.f32.vlgmr.msra.gmra.mrb[0].mxu0 %v18591_v3 }
  0x49   : > { %17428 = vmatprep.mubr.msk.f32.mxu1 %vm18487_vm1, %v18486_v1  ;;  %1264 = vmatprep.mubr.f32.mxu0 %v18486_v1 }
  0x4a   : > { %6771 = vrot.lane.b32.xlu0 %v18600_v6, %s18494_s11 }
  0x4b   : > { %6773 = vrot.lane.b32.xlu1 %v18604_v8, %s18494_s11 }
  0x4e   : > { %6769 = vrot.lane.b32.xlu0 %v18602_v7, %s18494_s11 }
  0x4f   : > { %7702 = vrot.lane.b32.xlu1 %v18600_v6, %s18495_s14 }
  0x52   : > { %7704 = vrot.lane.b32.xlu0 %v18604_v8, %s18495_s14 }
  0x53   : > { %7700 = vrot.lane.b32.xlu1 %v18602_v7, %s18495_s14 }
  0x8d   : > { %v1186_v31 = vpop.permute.xlu0 %1185  ;;  %v1184_v32 = vpop.permute.xlu1 %1183 }
  0x8e   : > { %v1190_v34 = vsel %vm1189_vm2, %v1184_v32, %v1186_v31 }
  0x8f   : > { %v18710_v35 = vand.u32 4294901760, %v1190_v34 }
  0x91   : > { %v1283_v36 = vsub.f32 %v1190_v34, %v18710_v35  ;;  %v1188_v37 = vpop.permute.xlu0 %1187  ;;  %v2117_v54 = vpop.permute.xlu1 %2116 }
  0x92   : > { %v1191_v39 = vsel %vm1189_vm2, %v1186_v31, %v1188_v37  ;;  %v18714_v40 = vand.u32 4294901760, %v1188_v37 }
  0x93   : > { %v1198_v41 = vand.u32 4294901760, %v1191_v39  ;;  %v1284_v42 = vand.u32 4294901760, %v1283_v36 }
  0x94   : > { %v1741_v43 = vsub.f32 %v1188_v37, %v18714_v40  ;;  %17427 = vmatpush3.msra.mxu1 %v18714_v40 }
  0x95   : > { %v1277_v44 = vsub.f32 %v1191_v39, %v1198_v41  ;;  %1199 = vmatprep.subr.mxu0 %v1198_v41  ;;  %17429 = vmatmul.mubr.f32.vlgmr.msra.gmra.mrb[0].mxu1 %v1269_v38  ;;  %v1285_v47 = vsub.f32 %v1283_v36, %v1284_v42  ;;  %v2119_v53 = vpop.permute.xlu0 %2118  ;;  %v2115_v58 = vpop.permute.xlu1 %2114 }
  0x96   : > { %v1742_v45 = vand.u32 4294901760, %v1741_v43  ;;  %1201 = vmatpush1.msra.mxu0 %v18710_v35  ;;  %17431 = vmatprep.subr.mxu1 %v18486_v1  ;;  %v2122_v55 = vsel %vm2120_vm3, %v2117_v54, %v2119_v53  ;;  %v2121_v61 = vsel %vm2120_vm3, %v2115_v58, %v2117_v54  ;;  %v18755_v63 = vand.u32 4294901760, %v2119_v53 }
  0x97   : > { %1270 = vmatmul.mubr.f32.vlgmr.msra.gmra.mrb[0].mxu0 %v1269_v38  ;;  %17433 = vmatprep.mubr.msk.f32.mxu1 %vm18487_vm1, %v18486_v1  ;;  %v1278_v46 = vand.u32 4294901760, %v1277_v44  ;;  %v1286_v52 = vand.u32 4294901760, %v1285_v47  ;;  %v18741_v57 = vand.u32 4294901760, %v2122_v55  ;;  %v18761_v0 = vand.u32 4294901760, %v2121_v61  ;;  %v17164_v47 = vld [vmem:[%s19850_s1 + $0x20] sm:$0xff] }
  0x98   : > { %v1743_v48 = vsub.f32 %v1741_v43, %v1742_v45  ;;  %1350 = vmatprep.mubr.f32.mxu0 %v18486_v1  ;;  %v2672_v4 = vsub.f32 %v2119_v53, %v18755_v63 }
  0x99   : > { %v1279_v49 = vsub.f32 %v1277_v44, %v1278_v46  ;;  %v18750_v60 = vsub.f32 %v2122_v55, %v18741_v57  ;;  %v2214_v5 = vsub.f32 %v2121_v61, %v18761_v0  ;;  %v3048_v21 = vpop.permute.xlu0 %3047 }
  0x9a   : > { %v1744_v50 = vand.u32 4294901760, %v1743_v48  ;;  %v2673_v11 = vand.u32 4294901760, %v2672_v4 }
  0x9b   : > { %v1280_v51 = vand.u32 4294901760, %v1279_v49  ;;  %v2209_v3 = vand.u32 4294901760, %v18750_v60  ;;  %v2215_v12 = vand.u32 4294901760, %v2214_v5 }
  0x9c   : > { %17432 = vmatpush3.msra.mxu1 %v1744_v50  ;;  %v2674_v15 = vsub.f32 %v2672_v4, %v2673_v11  ;;  %v3989_v50 = vsel %vm260_vm0, %v17164_v47, 0 }
  0x9d   : > { %1281 = vmatprep.subr.mxu0 %v1280_v51  ;;  %17434 = vmatmul.mubr.f32.vlgmr.msra.gmra.mrb[0].mxu1 %v18697_v28  ;;  %v2210_v10 = vsub.f32 %v18750_v60, %v2209_v3  ;;  %v2216_v16 = vsub.f32 %v2214_v5, %v2215_v12  ;;  %v3050_v20 = vpop.permute.xlu1 %3049  ;;  %v3046_v25 = vpop.permute.xlu0 %3045  ;;  %v18887_v53 = vand.u32 4294901760, %v3989_v50 }
  0x9e   : > { %17436 = vmatprep.subr.mxu1 %v18486_v1  ;;  %1287 = vmatpush1.msra.mxu0 %v1286_v52  ;;  %v2675_v18 = vand.u32 4294901760, %v2674_v15  ;;  %v3053_v22 = vsel %vm3051_vm4, %v3048_v21, %v3050_v20  ;;  %v3052_v27 = vsel %vm3051_vm4, %v3046_v25, %v3048_v21 }
  0x9f   : > { %17437 = vmatpush3.msra.mxu1 %v1741_v43  ;;  %1352 = vmatmul.mubr.f32.vlgmr.msra.gmra.mrb[0].mxu0 %v18697_v28  ;;  %v2211_v14 = vand.u32 4294901760, %v2210_v10  ;;  %v2217_v19 = vand.u32 4294901760, %v2216_v16  ;;  %v18809_v24 = vand.u32 4294901760, %v3053_v22  ;;  %v18829_v31 = vand.u32 4294901760, %v3052_v27 }
  0xa0   : > { %1360 = vmatprep.subr.mxu0 %v1277_v44  ;;  %17438 = vmatprep.mubr.msk.f32.mxu1 %vm18487_vm1, %v18486_v1  ;;  %v4059_v56 = vsub.f32 %v3989_v50, %v18887_v53 }
  0xa1   : > { %1363 = vmatpush1.msra.mxu0 %v1283_v36  ;;  %17441 = vmatprep.subr.mxu1 %v18486_v1  ;;  %v3145_v6 = vsub.f32 %v3052_v27, %v18829_v31  ;;  %v3981_v44 = vpop.permute.xlu0 %3980 }
  0xa2   : > { %1436 = vmatprep.subr.mxu0 %v1198_v41  ;;  %1426 = vmatprep.mubr.f32.mxu0 %v18486_v1  ;;  %v18889_v54 = vand.u32 4294901760, %v3981_v44 }
  0xa3   : > { %v3146_v37 = vand.u32 4294901760, %v3145_v6 }
  0xa4   : > { %v4534_v58 = vsub.f32 %v3981_v44, %v18889_v54 }
  0xa5   : > { %17439 = vmatmul.mubr.f32.vlgmr.msra.gmra.mrb[0].mxu1 %v1266_v29 }
  0xa6   : > { %17442 = vmatpush3.msra.mxu1 %v18714_v40  ;;  %17443 = vmatprep.mubr.msk.f32.mxu1 %vm18487_vm1, %v18486_v1 }
  0xa7   : > { %1429 = vmatmul.mubr.f32.vlgmr.msra.gmra.mrb[0].mxu0 %v1266_v29  ;;  %17446 = vmatprep.subr.mxu1 %v18486_v1  ;;  %v18821_v29 = vand.u32 4294901760, %v3058_v26 }
  0xa8   : > { %1438 = vmatpush1.msra.mxu0 %v18710_v35  ;;  %1501 = vmatprep.mubr.f32.mxu0 %v18486_v1 }
  0xa9   : > { %1514 = vmatprep.subr.mxu0 %v1278_v46  ;;  %v3128_v32 = vsub.f32 %v3058_v26, %v18821_v29 }
  0xab   : > { %v3129_v8 = vand.u32 4294901760, %v3128_v32 }
  0xad   : > { %17444 = vmatmul.mubr.f32.vlgmr.msra.gmra.mrb[0].mxu1 %v18706_v30  ;;  %v3130_v38 = vsub.f32 %v3128_v32, %v3129_v8 }
  0xae   : > { %17447 = vmatpush3.msra.mxu1 %v1742_v45  ;;  %17448 = vmatprep.mubr.msk.f32.mxu1 %vm18487_vm1, %v18486_v1  ;;  %v3979_v45 = vpop.permute.xlu1 %3978 }
  0xaf   : > { %1505 = vmatmul.mubr.f32.vlgmr.msra.gmra.mrb[0].mxu0 %v18706_v30  ;;  %17451 = vmatprep.subr.mxu1 %v18486_v1  ;;  %v18823_v30 = vand.u32 4294901760, %v3050_v20  ;;  %v3131_v7 = vand.u32 4294901760, %v3130_v38  ;;  %v3984_v46 = vsel %vm3982_vm5, %v3979_v45, %v3981_v44 }
  0xb0   : > { %1518 = vmatpush1.msra.mxu0 %v1284_v42  ;;  %1581 = vmatprep.mubr.f32.mxu0 %v18486_v1  ;;  %v18877_v48 = vand.u32 4294901760, %v3984_v46 }
  0xb1   : > { %1590 = vmatprep.subr.mxu0 %v1198_v41  ;;  %v3603_v34 = vsub.f32 %v3050_v20, %v18823_v30  ;;  %v3147_v41 = vsub.f32 %v3145_v6, %v3146_v37 }
  0xb2   : > { %v3977_v49 = vpop.permute.xlu1 %3976  ;;  %v4070_v51 = vsub.f32 %v3984_v46, %v18877_v48 }
  0xb3   : > { %v3604_v36 = vand.u32 4294901760, %v3603_v34  ;;  %v3148_v43 = vand.u32 4294901760, %v3147_v41  ;;  %v3983_v52 = vsel %vm3982_vm5, %v3977_v49, %v3979_v45 }
  0xb4   : > { %v18891_v55 = vand.u32 4294901760, %v3983_v52 }
  0xb5   : > { %17449 = vmatmul.mubr.f32.vlgmr.msra.gmra.mrb[0].mxu1 %v18697_v28 }
  0xb6   : > { %17452 = vmatpush3.msra.mxu1 %v18714_v40  ;;  %17453 = vmatprep.mubr.msk.f32.mxu1 %vm18487_vm1, %v18486_v1  ;;  %v3605_v40 = vsub.f32 %v3603_v34, %v3604_v36  ;;  %v4076_v59 = vsub.f32 %v3983_v52, %v18891_v55 }
  0xb7   : > { %1583 = vmatmul.mubr.f32.vlgmr.msra.gmra.mrb[0].mxu0 %v18697_v28  ;;  %17456 = vmatprep.subr.mxu1 %v18486_v1 }
  0xb8   : > { %1592 = vmatpush1.msra.mxu0 %v18710_v35  ;;  %1655 = vmatprep.mubr.f32.mxu0 %v18486_v1  ;;  %v3606_v42 = vand.u32 4294901760, %v3605_v40 }
  0xb9   : > { %2130 = vmatprep.subr.mxu0 %v18741_v57 }
  0xbd   : > { %17454 = vmatmul.mubr.f32.vlgmr.msra.gmra.mrb[0].mxu1 %v18697_v28 }
  0xbe   : > { %17457 = vmatpush3.msra.mxu1 %v18755_v63  ;;  %17458 = vmatprep.mubr.msk.f32.mxu1 %vm18487_vm1, %v18486_v1 }
  0xbf   : > { %1657 = vmatmul.mubr.f32.vlgmr.msra.gmra.mrb[0].mxu0 %v18697_v28  ;;  %17461 = vmatprep.subr.mxu1 %v18486_v1  ;;  %v18819_v28 = vsub.f32 %v3053_v22, %v18809_v24 }
  0xc0   : > { %2132 = vmatpush1.msra.mxu0 %v18761_v0  ;;  %2195 = vmatprep.mubr.f32.mxu0 %v18486_v1 }
  0xc1   : > { %2212 = vmatprep.subr.mxu0 %v2211_v14  ;;  %v3140_v33 = vand.u32 4294901760, %v18819_v28  ;;  %v17165_v14 = vld [vmem:[%s19850_s1 + $0x28] sm:$0xff] }
  0xc3   : > { %v3141_v35 = vsub.f32 %v18819_v28, %v3140_v33 }
  0xc5   : > { %17459 = vmatmul.mubr.f32.vlgmr.msra.gmra.mrb[0].mxu1 %v2200_v17  ;;  %v3142_v39 = vand.u32 4294901760, %v3141_v35 }
  0xc6   : > { %17462 = vmatpush3.msra.mxu1 %v2675_v18  ;;  %17463 = vmatprep.mubr.msk.f32.mxu1 %vm18487_vm1, %v18486_v1 }
  0xc7   : > { %2201 = vmatmul.mubr.f32.vlgmr.msra.gmra.mrb[0].mxu0 %v2200_v17  ;;  %17466 = vmatprep.subr.mxu1 %v18486_v1  ;;  %v4920_v17 = vsel %vm260_vm0, %v17165_v14, 0 }
  0xc8   : > { %2218 = vmatpush1.msra.mxu0 %v2217_v19  ;;  %2281 = vmatprep.mubr.f32.mxu0 %v18486_v1  ;;  %v18944_v20 = vand.u32 4294901760, %v4920_v17 }
  0xc9   : > { %2291 = vmatprep.subr.mxu0 %v18750_v60  ;;  %v4060_v60 = vand.u32 4294901760, %v4059_v56 }
  0xca   : > { %v4990_v23 = vsub.f32 %v4920_v17, %v18944_v20 }
  0xcc   : > { %v4991_v27 = vand.u32 4294901760, %v4990_v23 }
  0xcd   : > { %17464 = vmatmul.mubr.f32.vlgmr.msra.gmra.mrb[0].mxu1 %v18753_v62 }
  0xce   : > { %17467 = vmatpush3.msra.mxu1 %v2672_v4  ;;  %17468 = vmatprep.mubr.msk.f32.mxu1 %vm18487_vm1, %v18486_v1 }
  0xcf   : > { %2283 = vmatmul.mubr.f32.vlgmr.msra.gmra.mrb[0].mxu0 %v18753_v62  ;;  %17471 = vmatprep.subr.mxu1 %v18486_v1 }
  0xd0   : > { %2294 = vmatpush1.msra.mxu0 %v2214_v5  ;;  %2357 = vmatprep.mubr.f32.mxu0 %v18486_v1 }
  0xd1   : > { %2367 = vmatprep.subr.mxu0 %v18741_v57 }
  0xd5   : > { %17469 = vmatmul.mubr.f32.vlgmr.msra.gmra.mrb[0].mxu1 %v2197_v2 }
  0xd6   : > { %17472 = vmatpush3.msra.mxu1 %v18755_v63  ;;  %17473 = vmatprep.mubr.msk.f32.mxu1 %vm18487_vm1, %v18486_v1 }
  0xd7   : > { %2360 = vmatmul.mubr.f32.vlgmr.msra.gmra.mrb[0].mxu0 %v2197_v2  ;;  %17476 = vmatprep.subr.mxu1 %v18486_v1 }
  0xd8   : > { %2369 = vmatpush1.msra.mxu0 %v18761_v0  ;;  %2432 = vmatprep.mubr.f32.mxu0 %v18486_v1 }
  0xd9   : > { %2445 = vmatprep.subr.mxu0 %v2209_v3 }
  0xdd   : > { %17474 = vmatmul.mubr.f32.vlgmr.msra.gmra.mrb[0].mxu1 %v2198_v9 }
  0xde   : > { %17477 = vmatpush3.msra.mxu1 %v2673_v11  ;;  %17478 = vmatprep.mubr.msk.f32.mxu1 %vm18487_vm1, %v18486_v1  ;;  %v4912_v11 = vpop.permute.xlu1 %4911 }
  0xdf   : > { %2436 = vmatmul.mubr.f32.vlgmr.msra.gmra.mrb[0].mxu0 %v2198_v9  ;;  %17481 = vmatprep.subr.mxu1 %v18486_v1  ;;  %v18946_v21 = vand.u32 4294901760, %v4912_v11 }
  0xe0   : > { %2449 = vmatpush1.msra.mxu0 %v2215_v12  ;;  %2512 = vmatprep.mubr.f32.mxu0 %v18486_v1  ;;  %v4910_v12 = vpop.permute.xlu0 %4909 }
  0xe1   : > { %2521 = vmatprep.subr.mxu0 %v18741_v57  ;;  %v4071_v57 = vand.u32 4294901760, %v4070_v51  ;;  %v4915_v13 = vsel %vm4913_vm6, %v4910_v12, %v4912_v11  ;;  %v5465_v25 = vsub.f32 %v4912_v11, %v18946_v21 }
  0xe2   : > { %v18934_v15 = vand.u32 4294901760, %v4915_v13 }
  0xe3   : > { %v4072_v61 = vsub.f32 %v4070_v51, %v4071_v57 }
  0xe4   : > { %v4908_v16 = vpop.permute.xlu0 %4907  ;;  %v5001_v19 = vsub.f32 %v4915_v13, %v18934_v15 }
  0xe5   : > { %17479 = vmatmul.mubr.f32.vlgmr.msra.gmra.mrb[0].mxu1 %v18753_v62  ;;  %v4073_v2 = vand.u32 4294901760, %v4072_v61  ;;  %v4914_v18 = vsel %vm4913_vm6, %v4908_v16, %v4910_v12 }
  0xe6   : > { %17482 = vmatpush3.msra.mxu1 %v18755_v63  ;;  %17483 = vmatprep.mubr.msk.f32.mxu1 %vm18487_vm1, %v18486_v1  ;;  %v4077_v63 = vand.u32 4294901760, %v4076_v59  ;;  %v18948_v22 = vand.u32 4294901760, %v4914_v18 }
  0xe7   : > { %2514 = vmatmul.mubr.f32.vlgmr.msra.gmra.mrb[0].mxu0 %v18753_v62  ;;  %17486 = vmatprep.subr.mxu1 %v18486_v1 }
  0xe8   : > { %2523 = vmatpush1.msra.mxu0 %v18761_v0  ;;  %2586 = vmatprep.mubr.f32.mxu0 %v18486_v1  ;;  %v4061_v0 = vsub.f32 %v4059_v56, %v4060_v60  ;;  %v4078_v4 = vsub.f32 %v4076_v59, %v4077_v63  ;;  %v5007_v26 = vsub.f32 %v4914_v18, %v18948_v22 }
  0xe9   : > { %3061 = vmatprep.subr.mxu0 %v18809_v24 }
  0xea   : > { %v4062_v5 = vand.u32 4294901760, %v4061_v0  ;;  %v4079_v10 = vand.u32 4294901760, %v4078_v4  ;;  %v17167_v4 = vld [vmem:[%s19850_s1 + $0x38] sm:$0xff] }
  0xed   : > { %17484 = vmatmul.mubr.f32.vlgmr.msra.gmra.mrb[0].mxu1 %v18753_v62 }
  0xee   : > { %17487 = vmatpush3.msra.mxu1 %v18823_v30  ;;  %17488 = vmatprep.mubr.msk.f32.mxu1 %vm18487_vm1, %v18486_v1 }
  0xef   : > { %2588 = vmatmul.mubr.f32.vlgmr.msra.gmra.mrb[0].mxu0 %v18753_v62  ;;  %17491 = vmatprep.subr.mxu1 %v18486_v1  ;;  %v4535_v62 = vand.u32 4294901760, %v4534_v58 }
  0xf0   : > { %3063 = vmatpush1.msra.mxu0 %v18829_v31  ;;  %3126 = vmatprep.mubr.f32.mxu0 %v18486_v1 }
  0xf1   : > { %3143 = vmatprep.subr.mxu0 %v3142_v39  ;;  %v4536_v3 = vsub.f32 %v4534_v58, %v4535_v62  ;;  %v17166_v39 = vld [vmem:[%s19850_s1 + $0x30] sm:$0xff] }
  0xf3   : > { %v4537_v9 = vand.u32 4294901760, %v4536_v3 }
  0xf5   : > { %17489 = vmatmul.mubr.f32.vlgmr.msra.gmra.mrb[0].mxu1 %v3131_v7 }
  0xf6   : > { %17492 = vmatpush3.msra.mxu1 %v3606_v42  ;;  %17493 = vmatprep.mubr.msk.f32.mxu1 %vm18487_vm1, %v18486_v1 }
  0xf7   : > { %3132 = vmatmul.mubr.f32.vlgmr.msra.gmra.mrb[0].mxu0 %v3131_v7  ;;  %17496 = vmatprep.subr.mxu1 %v18486_v1  ;;  %v5851_v7 = vsel %vm260_vm0, %v17166_v39, 0 }
  0xf8   : > { %3149 = vmatpush1.msra.mxu0 %v3148_v43  ;;  %3212 = vmatprep.mubr.f32.mxu0 %v18486_v1  ;;  %v19003_v44 = vand.u32 4294901760, %v5851_v7 }
  0xf9   : > { %3222 = vmatprep.subr.mxu0 %v18819_v28 }
  0xfa   : > { %v5921_v47 = vsub.f32 %v5851_v7, %v19003_v44 }
  0xfd   : > { %17494 = vmatmul.mubr.f32.vlgmr.msra.gmra.mrb[0].mxu1 %v18821_v29 }
  0xfe   : > { %17497 = vmatpush3.msra.mxu1 %v3603_v34  ;;  %17498 = vmatprep.mubr.msk.f32.mxu1 %vm18487_vm1, %v18486_v1 }
  0xff   : > { %3214 = vmatmul.mubr.f32.vlgmr.msra.gmra.mrb[0].mxu0 %v18821_v29  ;;  %17501 = vmatprep.subr.mxu1 %v18486_v1 }
 0x100   : > { %3225 = vmatpush1.msra.mxu0 %v3145_v6  ;;  %3288 = vmatprep.mubr.f32.mxu0 %v18486_v1 }
 0x101   : > { %3298 = vmatprep.subr.mxu0 %v18809_v24 }
 0x105   : > { %17499 = vmatmul.mubr.f32.vlgmr.msra.gmra.mrb[0].mxu1 %v3128_v32 }
 0x106   : > { %17502 = vmatpush3.msra.mxu1 %v18823_v30  ;;  %17503 = vmatprep.mubr.msk.f32.mxu1 %vm18487_vm1, %v18486_v1 }
 0x107   : > { %3291 = vmatmul.mubr.f32.vlgmr.msra.gmra.mrb[0].mxu0 %v3128_v32  ;;  %17506 = vmatprep.subr.mxu1 %v18486_v1 }
 0x108   : > { %3300 = vmatpush1.msra.mxu0 %v18829_v31  ;;  %3363 = vmatprep.mubr.f32.mxu0 %v18486_v1 }
 0x109   : > { %3376 = vmatprep.subr.mxu0 %v3140_v33 }
 0x10d   : > { %17504 = vmatmul.mubr.f32.vlgmr.msra.gmra.mrb[0].mxu1 %v3129_v8 }
 0x10e   : > { %17507 = vmatpush3.msra.mxu1 %v3604_v36  ;;  %17508 = vmatprep.mubr.msk.f32.mxu1 %vm18487_vm1, %v18486_v1  ;;  %v5843_v36 = vpop.permute.xlu0 %5842 }
 0x10f   : > { %3367 = vmatmul.mubr.f32.vlgmr.msra.gmra.mrb[0].mxu0 %v3129_v8  ;;  %17511 = vmatprep.subr.mxu1 %v18486_v1  ;;  %v19005_v45 = vand.u32 4294901760, %v5843_v36 }
 0x110   : > { %3380 = vmatpush1.msra.mxu0 %v3146_v37  ;;  %3443 = vmatprep.mubr.f32.mxu0 %v18486_v1  ;;  %v5841_v37 = vpop.permute.xlu1 %5840 }
 0x111   : > { %3452 = vmatprep.subr.mxu0 %v18809_v24  ;;  %v5002_v24 = vand.u32 4294901760, %v5001_v19  ;;  %v5846_v38 = vsel %vm5844_vm7, %v5841_v37, %v5843_v36  ;;  %v19014_v49 = vsub.f32 %v5843_v36, %v19005_v45 }
 0x112   : > { %v18991_v40 = vand.u32 4294901760, %v5846_v38 }
 0x113   : > { %v5003_v28 = vsub.f32 %v5001_v19, %v5002_v24 }
 0x114   : > { %v5839_v41 = vpop.permute.xlu1 %5838  ;;  %v19000_v42 = vsub.f32 %v5846_v38, %v18991_v40 }
 0x115   : > { %17509 = vmatmul.mubr.f32.vlgmr.msra.gmra.mrb[0].mxu1 %v18821_v29  ;;  %v5004_v32 = vand.u32 4294901760, %v5003_v28  ;;  %v5845_v43 = vsel %vm5844_vm7, %v5839_v41, %v5841_v37 }
 0x116   : > { %17512 = vmatpush3.msra.mxu1 %v18823_v30  ;;  %17513 = vmatprep.mubr.msk.f32.mxu1 %vm18487_vm1, %v18486_v1  ;;  %v5008_v30 = vand.u32 4294901760, %v5007_v26  ;;  %v19007_v46 = vand.u32 4294901760, %v5845_v43 }
 0x117   : > { %3445 = vmatmul.mubr.f32.vlgmr.msra.gmra.mrb[0].mxu0 %v18821_v29  ;;  %17516 = vmatprep.subr.mxu1 %v18486_v1 }
 0x118   : > { %3454 = vmatpush1.msra.mxu0 %v18829_v31  ;;  %3517 = vmatprep.mubr.f32.mxu0 %v18486_v1  ;;  %v4992_v31 = vsub.f32 %v4990_v23, %v4991_v27  ;;  %v5009_v34 = vsub.f32 %v5007_v26, %v5008_v30  ;;  %v19022_v50 = vsub.f32 %v5845_v43, %v19007_v46  ;;  %v6774_v0 = vpop.permute.xlu1 %6773 }
 0x119   : > { %3992 = vmatprep.subr.mxu0 %v18877_v48  ;;  %v19078_v14 = vand.u32 4294901760, %v6774_v0 }
 0x11a   : > { %v4993_v6 = vand.u32 4294901760, %v4992_v31  ;;  %v5010_v35 = vand.u32 4294901760, %v5009_v34  ;;  %v17168_v34 = vld [vmem:[%s19850_s1 + $0x40] sm:$0xff] }
 0x11b   : > { %v7327_v18 = vsub.f32 %v6774_v0, %v19078_v14 }
 0x11d   : > { %17514 = vmatmul.mubr.f32.vlgmr.msra.gmra.mrb[0].mxu1 %v18821_v29 }
 0x11e   : > { %17517 = vmatpush3.msra.mxu1 %v18889_v54  ;;  %17518 = vmatprep.mubr.msk.f32.mxu1 %vm18487_vm1, %v18486_v1 }
 0x11f   : > { %3519 = vmatmul.mubr.f32.vlgmr.msra.gmra.mrb[0].mxu0 %v18821_v29  ;;  %17521 = vmatprep.subr.mxu1 %v18486_v1  ;;  %v5466_v29 = vand.u32 4294901760, %v5465_v25 }
 0x120   : > { %3994 = vmatpush1.msra.mxu0 %v18891_v55  ;;  %4057 = vmatprep.mubr.f32.mxu0 %v18486_v1 }
 0x121   : > { %4074 = vmatprep.subr.mxu0 %v4073_v2  ;;  %v5467_v33 = vsub.f32 %v5465_v25, %v5466_v29  ;;  %v6772_v2 = vpop.permute.xlu0 %6771 }
 0x122   : > { %v6777_v3 = vsel %vm6775_vm8, %v6772_v2, %v6774_v0 }
 0x123   : > { %v5468_v8 = vand.u32 4294901760, %v5467_v33 }
 0x125   : > { %17519 = vmatmul.mubr.f32.vlgmr.msra.gmra.mrb[0].mxu1 %v4062_v5 }
 0x126   : > { %17522 = vmatpush3.msra.mxu1 %v4537_v9  ;;  %17523 = vmatprep.mubr.msk.f32.mxu1 %vm18487_vm1, %v18486_v1  ;;  %v6770_v9 = vpop.permute.xlu0 %6769 }
 0x127   : > { %4063 = vmatmul.mubr.f32.vlgmr.msra.gmra.mrb[0].mxu0 %v4062_v5  ;;  %17526 = vmatprep.subr.mxu1 %v18486_v1  ;;  %v19066_v5 = vand.u32 4294901760, %v6777_v3  ;;  %v6776_v11 = vsel %vm6775_vm8, %v6770_v9, %v6772_v2 }
 0x128   : > { %4080 = vmatpush1.msra.mxu0 %v4079_v10  ;;  %4143 = vmatprep.mubr.f32.mxu0 %v18486_v1  ;;  %v6782_v10 = vsel %vm260_vm0, %v17167_v4, 0 }
 0x129   : > { %4153 = vmatprep.subr.mxu0 %v4070_v51  ;;  %v5922_v51 = vand.u32 4294901760, %v5921_v47  ;;  %v6863_v12 = vsub.f32 %v6777_v3, %v19066_v5  ;;  %v19076_v13 = vand.u32 4294901760, %v6782_v10 }
 0x12a   : > { %v7705_v31 = vpop.permute.xlu0 %7704 }
 0x12b   : > { %v6852_v16 = vsub.f32 %v6782_v10, %v19076_v13  ;;  %v6864_v17 = vand.u32 4294901760, %v6863_v12  ;;  %v19135_v39 = vand.u32 4294901760, %v7705_v31 }
 0x12d   : > { %17524 = vmatmul.mubr.f32.vlgmr.msra.gmra.mrb[0].mxu1 %v18887_v53 }
 0x12e   : > { %17527 = vmatpush3.msra.mxu1 %v4534_v58  ;;  %17528 = vmatprep.mubr.msk.f32.mxu1 %vm18487_vm1, %v18486_v1 }
 0x12f   : > { %4145 = vmatmul.mubr.f32.vlgmr.msra.gmra.mrb[0].mxu0 %v18887_v53  ;;  %17531 = vmatprep.subr.mxu1 %v18486_v1 }
 0x130   : > { %4156 = vmatpush1.msra.mxu0 %v4076_v59  ;;  %4219 = vmatprep.mubr.f32.mxu0 %v18486_v1 }
 0x131   : > { %4229 = vmatprep.subr.mxu0 %v18877_v48 }
 0x135   : > { %17529 = vmatmul.mubr.f32.vlgmr.msra.gmra.mrb[0].mxu1 %v4059_v56 }
 0x136   : > { %17532 = vmatpush3.msra.mxu1 %v18889_v54  ;;  %17533 = vmatprep.mubr.msk.f32.mxu1 %vm18487_vm1, %v18486_v1 }
 0x137   : > { %4222 = vmatmul.mubr.f32.vlgmr.msra.gmra.mrb[0].mxu0 %v4059_v56  ;;  %17536 = vmatprep.subr.mxu1 %v18486_v1 }
 0x138   : > { %4231 = vmatpush1.msra.mxu0 %v18891_v55  ;;  %4294 = vmatprep.mubr.f32.mxu0 %v18486_v1 }
 0x139   : > { %4307 = vmatprep.subr.mxu0 %v4071_v57 }
 0x13d   : > { %17534 = vmatmul.mubr.f32.vlgmr.msra.gmra.mrb[0].mxu1 %v4060_v60 }
 0x13e   : > { %17537 = vmatpush3.msra.mxu1 %v4535_v62  ;;  %17538 = vmatprep.mubr.msk.f32.mxu1 %vm18487_vm1, %v18486_v1  ;;  %v250_v62 = vld [vmem:[%s19851_s2] sm:$0xff] }
 0x13f   : > { %4298 = vmatmul.mubr.f32.vlgmr.msra.gmra.mrb[0].mxu0 %v4060_v60  ;;  %17541 = vmatprep.subr.mxu1 %v18486_v1 }
 0x140   : > { %4311 = vmatpush1.msra.mxu0 %v4077_v63  ;;  %4374 = vmatprep.mubr.f32.mxu0 %v18486_v1  ;;  %v18496_v63 = vmov 0  }
 0x141   : > { %4383 = vmatprep.subr.mxu0 %v18877_v48  ;;  %v5933_v48 = vand.u32 4294901760, %v19000_v42  ;;  %18420 = vset.pattern.permute.xlu0 %v18496_v63 }
 0x142   : > { %253 = vperm.xlu0 %18420, %v250_v62   ;;  %18421 = vset.pattern.permute.xlu1 %v18496_v63 }
 0x143   : > { %v5934_v52 = vsub.f32 %v19000_v42, %v5933_v48 }
 0x145   : > { %17539 = vmatmul.mubr.f32.vlgmr.msra.gmra.mrb[0].mxu1 %v18887_v53  ;;  %v5935_v56 = vand.u32 4294901760, %v5934_v52 }
 0x146   : > { %17542 = vmatpush3.msra.mxu1 %v18889_v54  ;;  %17543 = vmatprep.mubr.msk.f32.mxu1 %vm18487_vm1, %v18486_v1  ;;  %v5939_v54 = vand.u32 4294901760, %v19022_v50 }
 0x147   : > { %4376 = vmatmul.mubr.f32.vlgmr.msra.gmra.mrb[0].mxu0 %v18887_v53  ;;  %17546 = vmatprep.subr.mxu1 %v18486_v1 }
 0x148   : > { %4385 = vmatpush1.msra.mxu0 %v18891_v55  ;;  %4448 = vmatprep.mubr.f32.mxu0 %v18486_v1  ;;  %v5923_v55 = vsub.f32 %v5921_v47, %v5922_v51  ;;  %v5940_v58 = vsub.f32 %v19022_v50, %v5939_v54 }
 0x149   : > { %4923 = vmatprep.subr.mxu0 %v18934_v15 }
 0x14a   : > { %v5924_v59 = vand.u32 4294901760, %v5923_v55  ;;  %v5941_v61 = vand.u32 4294901760, %v5940_v58  ;;  %v8637_v55 = vlaneseq }
 0x14d   : > { %17544 = vmatmul.mubr.f32.vlgmr.msra.gmra.mrb[0].mxu1 %v18887_v53 }
 0x14e   : > { %17547 = vmatpush3.msra.mxu1 %v18946_v21  ;;  %17548 = vmatprep.mubr.msk.f32.mxu1 %vm18487_vm1, %v18486_v1 }
 0x14f   : > { %4450 = vmatmul.mubr.f32.vlgmr.msra.gmra.mrb[0].mxu0 %v18887_v53  ;;  %17551 = vmatprep.subr.mxu1 %v18486_v1  ;;  %v6397_v53 = vand.u32 4294901760, %v19014_v49 }
 0x150   : > { %4925 = vmatpush1.msra.mxu0 %v18948_v22  ;;  %4988 = vmatprep.mubr.f32.mxu0 %v18486_v1 }
 0x151   : > { %5005 = vmatprep.subr.mxu0 %v5004_v32  ;;  %v6398_v57 = vsub.f32 %v19014_v49, %v6397_v53  ;;  %v7703_v32 = vpop.permute.xlu1 %7702 }
 0x152   : > { %v7708_v33 = vsel %vm7706_vm9, %v7703_v32, %v7705_v31 }
 0x153   : > { %v6399_v60 = vand.u32 4294901760, %v6398_v57 }
 0x155   : > { %17549 = vmatmul.mubr.f32.vlgmr.msra.gmra.mrb[0].mxu1 %v4993_v6 }
 0x156   : > { %17552 = vmatpush3.msra.mxu1 %v5468_v8  ;;  %17553 = vmatprep.mubr.msk.f32.mxu1 %vm18487_vm1, %v18486_v1  ;;  %v7701_v8 = vpop.permute.xlu1 %7700 }
 0x157   : > { %4994 = vmatmul.mubr.f32.vlgmr.msra.gmra.mrb[0].mxu0 %v4993_v6  ;;  %17556 = vmatprep.subr.mxu1 %v18486_v1  ;;  %v19123_v6 = vand.u32 4294901760, %v7708_v33  ;;  %v7707_v37 = vsel %vm7706_vm9, %v7701_v8, %v7703_v32 }
 0x158   : > { %5011 = vmatpush1.msra.mxu0 %v5010_v35  ;;  %5074 = vmatprep.mubr.f32.mxu0 %v18486_v1  ;;  %v7713_v35 = vsel %vm260_vm0, %v17168_v34, 0 }
 0x159   : > { %5084 = vmatprep.subr.mxu0 %v5001_v19  ;;  %v7794_v36 = vsub.f32 %v7708_v33, %v19123_v6  ;;  %v19133_v38 = vand.u32 4294901760, %v7713_v35 }
 0x15b   : > { %v7783_v41 = vsub.f32 %v7713_v35, %v19133_v38  ;;  %v7795_v7 = vand.u32 4294901760, %v7794_v36 }
 0x15d   : > { %17554 = vmatmul.mubr.f32.vlgmr.msra.gmra.mrb[0].mxu1 %v18944_v20 }
 0x15e   : > { %17557 = vmatpush3.msra.mxu1 %v5465_v25  ;;  %17558 = vmatprep.mubr.msk.f32.mxu1 %vm18487_vm1, %v18486_v1 }
 0x15f   : > { %5076 = vmatmul.mubr.f32.vlgmr.msra.gmra.mrb[0].mxu0 %v18944_v20  ;;  %17561 = vmatprep.subr.mxu1 %v18486_v1 }
 0x160   : > { %5087 = vmatpush1.msra.mxu0 %v5007_v26  ;;  %5150 = vmatprep.mubr.f32.mxu0 %v18486_v1 }
 0x161   : > { %5160 = vmatprep.subr.mxu0 %v18934_v15 }
 0x165   : > { %17559 = vmatmul.mubr.f32.vlgmr.msra.gmra.mrb[0].mxu1 %v4990_v23 }
 0x166   : > { %17562 = vmatpush3.msra.mxu1 %v18946_v21  ;;  %17563 = vmatprep.mubr.msk.f32.mxu1 %vm18487_vm1, %v18486_v1 }
 0x167   : > { %5153 = vmatmul.mubr.f32.vlgmr.msra.gmra.mrb[0].mxu0 %v4990_v23  ;;  %17566 = vmatprep.subr.mxu1 %v18486_v1 }
 0x168   : > { %5162 = vmatpush1.msra.mxu0 %v18948_v22  ;;  %5225 = vmatprep.mubr.f32.mxu0 %v18486_v1 }
 0x169   : > { %5238 = vmatprep.subr.mxu0 %v5002_v24 }
 0x16d   : > { %17564 = vmatmul.mubr.f32.vlgmr.msra.gmra.mrb[0].mxu1 %v4991_v27 }
 0x16e   : > { %17567 = vmatpush3.msra.mxu1 %v5466_v29  ;;  %17568 = vmatprep.mubr.msk.f32.mxu1 %vm18487_vm1, %v18486_v1 }
 0x16f   : > { %5229 = vmatmul.mubr.f32.vlgmr.msra.gmra.mrb[0].mxu0 %v4991_v27  ;;  %17571 = vmatprep.subr.mxu1 %v18486_v1 }
 0x170   : > { %5242 = vmatpush1.msra.mxu0 %v5008_v30  ;;  %5305 = vmatprep.mubr.f32.mxu0 %v18486_v1 }
 0x171   : > { %5314 = vmatprep.subr.mxu0 %v18934_v15  ;;  %v19080_v15 = vand.u32 4294901760, %v6776_v11 }
 0x173   : > { %v6869_v19 = vsub.f32 %v6776_v11, %v19080_v15 }
 0x175   : > { %17569 = vmatmul.mubr.f32.vlgmr.msra.gmra.mrb[0].mxu1 %v18944_v20  ;;  %v6870_v23 = vand.u32 4294901760, %v6869_v19 }
 0x176   : > { %17572 = vmatpush3.msra.mxu1 %v18946_v21  ;;  %17573 = vmatprep.mubr.msk.f32.mxu1 %vm18487_vm1, %v18486_v1  ;;  %v6865_v21 = vsub.f32 %v6863_v12, %v6864_v17 }
 0x177   : > { %5307 = vmatmul.mubr.f32.vlgmr.msra.gmra.mrb[0].mxu0 %v18944_v20  ;;  %17576 = vmatprep.subr.mxu1 %v18486_v1  ;;  %v6871_v27 = vsub.f32 %v6869_v19, %v6870_v23 }
 0x178   : > { %5316 = vmatpush1.msra.mxu0 %v18948_v22  ;;  %5379 = vmatprep.mubr.f32.mxu0 %v18486_v1  ;;  %v7328_v22 = vand.u32 4294901760, %v7327_v18  ;;  %v6866_v25 = vand.u32 4294901760, %v6865_v21  ;;  %v8686_v21 = vld [vmem:[%s19852_s3] sm:$0xff] }
 0x179   : > { %5854 = vmatprep.subr.mxu0 %v18991_v40  ;;  %v6872_v30 = vand.u32 4294901760, %v6871_v27 }
 0x17a   : > { %v7329_v26 = vsub.f32 %v7327_v18, %v7328_v22 }
 0x17c   : > { %v7330_v29 = vand.u32 4294901760, %v7329_v26 }
 0x17d   : > { %17574 = vmatmul.mubr.f32.vlgmr.msra.gmra.mrb[0].mxu1 %v18944_v20 }
 0x17e   : > { %17577 = vmatpush3.msra.mxu1 %v19005_v45  ;;  %17578 = vmatprep.mubr.msk.f32.mxu1 %vm18487_vm1, %v18486_v1 }
 0x17f   : > { %5381 = vmatmul.mubr.f32.vlgmr.msra.gmra.mrb[0].mxu0 %v18944_v20  ;;  %17581 = vmatprep.subr.mxu1 %v18486_v1  ;;  %v6853_v20 = vand.u32 4294901760, %v6852_v16 }
 0x180   : > { %5856 = vmatpush1.msra.mxu0 %v19007_v46  ;;  %5919 = vmatprep.mubr.f32.mxu0 %v18486_v1 }
 0x181   : > { %5936 = vmatprep.subr.mxu0 %v5935_v56  ;;  %v6854_v24 = vsub.f32 %v6852_v16, %v6853_v20  ;;  %v8638_v56 = vshrl.u32 %v8637_v55, 7 }
 0x183   : > { %v6855_v28 = vand.u32 4294901760, %v6854_v24  ;;  %v8647_v58 = vsub.s32 2, %v8638_v56  ;;  %v8639_v63 = vsub.s32 0, %v8638_v56 }
 0x185   : > { %17579 = vmatmul.mubr.f32.vlgmr.msra.gmra.mrb[0].mxu1 %v5924_v59 }
 0x186   : > { %17582 = vmatpush3.msra.mxu1 %v6399_v60  ;;  %17583 = vmatprep.mubr.msk.f32.mxu1 %vm18487_vm1, %v18486_v1  ;;  %v8635_v60 = vld [vmem:[%s19854_s5] sm:$0x7] }
 0x187   : > { %5925 = vmatmul.mubr.f32.vlgmr.msra.gmra.mrb[0].mxu0 %v5924_v59  ;;  %17586 = vmatprep.subr.mxu1 %v18486_v1 }
 0x188   : > { %5942 = vmatpush1.msra.mxu0 %v5941_v61  ;;  %6005 = vmatprep.mubr.f32.mxu0 %v18486_v1 }
 0x189   : > { %6015 = vmatprep.subr.mxu0 %v19000_v42  ;;  %v8258_v42 = vsub.f32 %v7705_v31, %v19135_v39 }
 0x18d   : > { %17584 = vmatmul.mubr.f32.vlgmr.msra.gmra.mrb[0].mxu1 %v19003_v44 }
 0x18e   : > { %17587 = vmatpush3.msra.mxu1 %v19014_v49  ;;  %17588 = vmatprep.mubr.msk.f32.mxu1 %vm18487_vm1, %v18486_v1 }
 0x18f   : > { %6007 = vmatmul.mubr.f32.vlgmr.msra.gmra.mrb[0].mxu0 %v19003_v44  ;;  %17591 = vmatprep.subr.mxu1 %v18486_v1 }
 0x190   : > { %6018 = vmatpush1.msra.mxu0 %v19022_v50  ;;  %6081 = vmatprep.mubr.f32.mxu0 %v18486_v1 }
 0x191   : > { %6091 = vmatprep.subr.mxu0 %v18991_v40 }
 0x195   : > { %17589 = vmatmul.mubr.f32.vlgmr.msra.gmra.mrb[0].mxu1 %v5921_v47 }
 0x196   : > { %17592 = vmatpush3.msra.mxu1 %v19005_v45  ;;  %17593 = vmatprep.mubr.msk.f32.mxu1 %vm18487_vm1, %v18486_v1 }
 0x197   : > { %6084 = vmatmul.mubr.f32.vlgmr.msra.gmra.mrb[0].mxu0 %v5921_v47  ;;  %17596 = vmatprep.subr.mxu1 %v18486_v1 }
 0x198   : > { %6093 = vmatpush1.msra.mxu0 %v19007_v46  ;;  %6156 = vmatprep.mubr.f32.mxu0 %v18486_v1 }
 0x199   : > { %6169 = vmatprep.subr.mxu0 %v5933_v48 }
 0x19d   : > { %17594 = vmatmul.mubr.f32.vlgmr.msra.gmra.mrb[0].mxu1 %v5922_v51 }
 0x19e   : > { %17597 = vmatpush3.msra.mxu1 %v6397_v53  ;;  %17598 = vmatprep.mubr.msk.f32.mxu1 %vm18487_vm1, %v18486_v1 }
 0x19f   : > { %6160 = vmatmul.mubr.f32.vlgmr.msra.gmra.mrb[0].mxu0 %v5922_v51  ;;  %17601 = vmatprep.subr.mxu1 %v18486_v1 }
 0x1a0   : > { %6173 = vmatpush1.msra.mxu0 %v5939_v54  ;;  %6236 = vmatprep.mubr.f32.mxu0 %v18486_v1 }
 0x1a1   : > { %6245 = vmatprep.subr.mxu0 %v18991_v40  ;;  %v19137_v40 = vand.u32 4294901760, %v7707_v37 }
 0x1a3   : > { %v7800_v43 = vsub.f32 %v7707_v37, %v19137_v40 }
 0x1a5   : > { %17599 = vmatmul.mubr.f32.vlgmr.msra.gmra.mrb[0].mxu1 %v19003_v44  ;;  %v7801_v47 = vand.u32 4294901760, %v7800_v43 }
 0x1a6   : > { %17602 = vmatpush3.msra.mxu1 %v19005_v45  ;;  %17603 = vmatprep.mubr.msk.f32.mxu1 %vm18487_vm1, %v18486_v1  ;;  %v7796_v45 = vsub.f32 %v7794_v36, %v7795_v7 }
 0x1a7   : > { %6238 = vmatmul.mubr.f32.vlgmr.msra.gmra.mrb[0].mxu0 %v19003_v44  ;;  %17606 = vmatprep.subr.mxu1 %v18486_v1  ;;  %v7802_v51 = vsub.f32 %v7800_v43, %v7801_v47 }
 0x1a8   : > { %6247 = vmatpush1.msra.mxu0 %v19007_v46  ;;  %6310 = vmatprep.mubr.f32.mxu0 %v18486_v1  ;;  %v8259_v46 = vand.u32 4294901760, %v8258_v42  ;;  %v7797_v49 = vand.u32 4294901760, %v7796_v45 }
 0x1a9   : > { %6785 = vmatprep.subr.mxu0 %v19066_v5  ;;  %v7803_v54 = vand.u32 4294901760, %v7802_v51 }
 0x1aa   : > { %v8260_v50 = vsub.f32 %v8258_v42, %v8259_v46 }
 0x1ac   : > { %v8261_v53 = vand.u32 4294901760, %v8260_v50 }
 0x1ad   : > { %17604 = vmatmul.mubr.f32.vlgmr.msra.gmra.mrb[0].mxu1 %v19003_v44 }
 0x1ae   : > { %17607 = vmatpush3.msra.mxu1 %v19078_v14  ;;  %17608 = vmatprep.mubr.msk.f32.mxu1 %vm18487_vm1, %v18486_v1 }
 0x1af   : > { %6312 = vmatmul.mubr.f32.vlgmr.msra.gmra.mrb[0].mxu0 %v19003_v44  ;;  %17611 = vmatprep.subr.mxu1 %v18486_v1  ;;  %v7784_v44 = vand.u32 4294901760, %v7783_v41 }
 0x1b0   : > { %6787 = vmatpush1.msra.mxu0 %v19080_v15  ;;  %6850 = vmatprep.mubr.f32.mxu0 %v18486_v1 }
 0x1b1   : > { %6867 = vmatprep.subr.mxu0 %v6866_v25  ;;  %v7785_v48 = vsub.f32 %v7783_v41, %v7784_v44 }
 0x1b3   : > { %v7786_v52 = vand.u32 4294901760, %v7785_v48  ;;  %v17169_v48 = vld [vmem:[%s19852_s3 + $0x8] sm:$0xff] }
 0x1b5   : > { %17609 = vmatmul.mubr.f32.vlgmr.msra.gmra.mrb[0].mxu1 %v6855_v28 }
 0x1b6   : > { %17612 = vmatpush3.msra.mxu1 %v7330_v29  ;;  %17613 = vmatprep.mubr.msk.f32.mxu1 %vm18487_vm1, %v18486_v1 }
 0x1b7   : > { %6856 = vmatmul.mubr.f32.vlgmr.msra.gmra.mrb[0].mxu0 %v6855_v28  ;;  %17616 = vmatprep.subr.mxu1 %v18486_v1 }
 0x1b8   : > { %6873 = vmatpush1.msra.mxu0 %v6872_v30  ;;  %6936 = vmatprep.mubr.f32.mxu0 %v18486_v1 }
 0x1b9   : > { %6946 = vmatprep.subr.mxu0 %v6863_v12  ;;  %v8640_v12 = vrot.slane %v8635_v60, %v8639_v63 }
 0x1bd   : > { %17614 = vmatmul.mubr.f32.vlgmr.msra.gmra.mrb[0].mxu1 %v19076_v13 }
 0x1be   : > { %17617 = vmatpush3.msra.mxu1 %v7327_v18  ;;  %17618 = vmatprep.mubr.msk.f32.mxu1 %vm18487_vm1, %v18486_v1 }
 0x1bf   : > { %6938 = vmatmul.mubr.f32.vlgmr.msra.gmra.mrb[0].mxu0 %v19076_v13  ;;  %17621 = vmatprep.subr.mxu1 %v18486_v1 }
 0x1c0   : > { %6949 = vmatpush1.msra.mxu0 %v6869_v19  ;;  %7012 = vmatprep.mubr.f32.mxu0 %v18486_v1 }
 0x1c1   : > { %7022 = vmatprep.subr.mxu0 %v19066_v5  ;;  %v254_v57 = vpop.permute.xlu0 %253 }
 0x1c5   : > { %17619 = vmatmul.mubr.f32.vlgmr.msra.gmra.mrb[0].mxu1 %v6852_v16 }
 0x1c6   : > { %17622 = vmatpush3.msra.mxu1 %v19078_v14  ;;  %17623 = vmatprep.mubr.msk.f32.mxu1 %vm18487_vm1, %v18486_v1 }
 0x1c7   : > { %7015 = vmatmul.mubr.f32.vlgmr.msra.gmra.mrb[0].mxu0 %v6852_v16  ;;  %17626 = vmatprep.subr.mxu1 %v18486_v1 }
 0x1c8   : > { %7024 = vmatpush1.msra.mxu0 %v19080_v15  ;;  %7087 = vmatprep.mubr.f32.mxu0 %v18486_v1 }
 0x1c9   : > { %7100 = vmatprep.subr.mxu0 %v6864_v17 }
 0x1cd   : > { %17624 = vmatmul.mubr.f32.vlgmr.msra.gmra.mrb[0].mxu1 %v6853_v20 }
 0x1ce   : > { %17627 = vmatpush3.msra.mxu1 %v7328_v22  ;;  %17628 = vmatprep.mubr.msk.f32.mxu1 %vm18487_vm1, %v18486_v1  ;;  %v8691_v22 = vsel %vm260_vm0, %v8686_v21, 0 }
 0x1cf   : > { %7091 = vmatmul.mubr.f32.vlgmr.msra.gmra.mrb[0].mxu0 %v6853_v20  ;;  %17631 = vmatprep.subr.mxu1 %v18486_v1 }
 0x1d0   : > { %7104 = vmatpush1.msra.mxu0 %v6870_v23  ;;  %7167 = vmatprep.mubr.f32.mxu0 %v18486_v1  ;;  %v19205_v23 = vand.u32 4294901760, %v8691_v22 }
 0x1d1   : > { %7176 = vmatprep.subr.mxu0 %v19066_v5  ;;  %v8648_v5 = vrot.slane %v8635_v60, %v8647_v58 }
 0x1d2   : > { %v19208_v24 = vsub.f32 %v8691_v22, %v19205_v23 }
 0x1d4   : > { %v19211_v26 = vand.u32 4294901760, %v19208_v24 }
 0x1d5   : > { %17629 = vmatmul.mubr.f32.vlgmr.msra.gmra.mrb[0].mxu1 %v19076_v13 }
 0x1d6   : > { %17632 = vmatpush3.msra.mxu1 %v19078_v14  ;;  %17633 = vmatprep.mubr.msk.f32.mxu1 %vm18487_vm1, %v18486_v1  ;;  %v8763_v29 = vsub.f32 %v19208_v24, %v19211_v26 }
 0x1d7   : > { %7169 = vmatmul.mubr.f32.vlgmr.msra.gmra.mrb[0].mxu0 %v19076_v13  ;;  %17636 = vmatprep.subr.mxu1 %v18486_v1 }
 0x1d8   : > { %7178 = vmatpush1.msra.mxu0 %v19080_v15  ;;  %7241 = vmatprep.mubr.f32.mxu0 %v18486_v1  ;;  %v8764_v34 = vand.u32 4294901760, %v8763_v29 }
 0x1d9   : > { %7716 = vmatprep.subr.mxu0 %v19123_v6 }
 0x1dd   : > { %17634 = vmatmul.mubr.f32.vlgmr.msra.gmra.mrb[0].mxu1 %v19076_v13 }
 0x1de   : > { %17637 = vmatpush3.msra.mxu1 %v19135_v39  ;;  %17638 = vmatprep.mubr.msk.f32.mxu1 %vm18487_vm1, %v18486_v1 }
 0x1df   : > { %7243 = vmatmul.mubr.f32.vlgmr.msra.gmra.mrb[0].mxu0 %v19076_v13  ;;  %17641 = vmatprep.subr.mxu1 %v18486_v1  ;;  %v8643_v13 = vsub.s32 1, %v8638_v56 }
 0x1e0   : > { %7718 = vmatpush1.msra.mxu0 %v19137_v40  ;;  %7781 = vmatprep.mubr.f32.mxu0 %v18486_v1 }
 0x1e1   : > { %7798 = vmatprep.subr.mxu0 %v7797_v49  ;;  %v8644_v19 = vrot.slane %v8635_v60, %v8643_v13  ;;  %v9632_v49 = vsel %vm260_vm0, %v17169_v48, 0 }
 0x1e2   : > { %v19345_v50 = vand.u32 4294901760, %v9632_v49 }
 0x1e4   : > { %v9702_v51 = vsub.f32 %v9632_v49, %v19345_v50 }
 0x1e5   : > { %17639 = vmatmul.mubr.f32.vlgmr.msra.gmra.mrb[0].mxu1 %v7786_v52 }
 0x1e6   : > { %17642 = vmatpush3.msra.mxu1 %v8261_v53  ;;  %17643 = vmatprep.mubr.msk.f32.mxu1 %vm18487_vm1, %v18486_v1  ;;  %v19348_v53 = vand.u32 4294901760, %v9702_v51 }
 0x1e7   : > { %7787 = vmatmul.mubr.f32.vlgmr.msra.gmra.mrb[0].mxu0 %v7786_v52  ;;  %17646 = vmatprep.subr.mxu1 %v18486_v1 }
 0x1e8   : > { %7804 = vmatpush1.msra.mxu0 %v7803_v54  ;;  %7867 = vmatprep.mubr.f32.mxu0 %v18486_v1 }
 0x1e9   : > { %7877 = vmatprep.subr.mxu0 %v7794_v36 }
 0x1ed   : > { %17644 = vmatmul.mubr.f32.vlgmr.msra.gmra.mrb[0].mxu1 %v19133_v38 }
 0x1ee   : > { %17647 = vmatpush3.msra.mxu1 %v8258_v42  ;;  %17648 = vmatprep.mubr.msk.f32.mxu1 %vm18487_vm1, %v18486_v1 }
 0x1ef   : > { %7869 = vmatmul.mubr.f32.vlgmr.msra.gmra.mrb[0].mxu0 %v19133_v38  ;;  %17651 = vmatprep.subr.mxu1 %v18486_v1 }
 0x1f0   : > { %7880 = vmatpush1.msra.mxu0 %v7800_v43  ;;  %7943 = vmatprep.mubr.f32.mxu0 %v18486_v1 }
 0x1f1   : > { %7953 = vmatprep.subr.mxu0 %v19123_v6 }
 0x1f5   : > { %17649 = vmatmul.mubr.f32.vlgmr.msra.gmra.mrb[0].mxu1 %v7783_v41 }
 0x1f6   : > { %17652 = vmatpush3.msra.mxu1 %v19135_v39  ;;  %17653 = vmatprep.mubr.msk.f32.mxu1 %vm18487_vm1, %v18486_v1 }
 0x1f7   : > { %7946 = vmatmul.mubr.f32.vlgmr.msra.gmra.mrb[0].mxu0 %v7783_v41  ;;  %17656 = vmatprep.subr.mxu1 %v18486_v1 }
 0x1f8   : > { %7955 = vmatpush1.msra.mxu0 %v19137_v40  ;;  %8018 = vmatprep.mubr.f32.mxu0 %v18486_v1 }
 0x1f9   : > { %8031 = vmatprep.subr.mxu0 %v7795_v7  ;;  %v19245_v7 = vld [vmem:[#allocation2 + $0x18] sm:$0xff] }
 0x1fd   : > { %17654 = vmatmul.mubr.f32.vlgmr.msra.gmra.mrb[0].mxu1 %v7784_v44 }
 0x1fe   : > { %17657 = vmatpush3.msra.mxu1 %v8259_v46  ;;  %17658 = vmatprep.mubr.msk.f32.mxu1 %vm18487_vm1, %v18486_v1 }
 0x1ff   : > { %8022 = vmatmul.mubr.f32.vlgmr.msra.gmra.mrb[0].mxu0 %v7784_v44  ;;  %17661 = vmatprep.subr.mxu1 %v18486_v1 }
 0x200   : > { %8035 = vmatpush1.msra.mxu0 %v7801_v47  ;;  %8098 = vmatprep.mubr.f32.mxu0 %v18486_v1 }
 0x201   : > { %8107 = vmatprep.subr.mxu0 %v19123_v6 }
 0x205   : > { %17659 = vmatmul.mubr.f32.vlgmr.msra.gmra.mrb[0].mxu1 %v19133_v38 }
 0x206   : > { %17662 = vmatpush3.msra.mxu1 %v19135_v39  ;;  %17663 = vmatprep.mubr.msk.f32.mxu1 %vm18487_vm1, %v18486_v1 }
 0x207   : > { %8100 = vmatmul.mubr.f32.vlgmr.msra.gmra.mrb[0].mxu0 %v19133_v38  ;;  %17666 = vmatprep.subr.mxu1 %v18486_v1 }
 0x208   : > { %8109 = vmatpush1.msra.mxu0 %v19137_v40  ;;  %8172 = vmatprep.mubr.f32.mxu0 %v18486_v1 }
 0x20d   : > { %17664 = vmatmul.mubr.f32.vlgmr.msra.gmra.mrb[0].mxu1 %v19133_v38 }
 0x20e   : > { %17668 = vmatprep.mubr.msk.f32.mxu1 %vm18487_vm1, %v18486_v1 }
 0x20f   : > { %8174 = vmatmul.mubr.f32.vlgmr.msra.gmra.mrb[0].mxu0 %v19133_v38 }
 0x210   : > { %8759 = vmatprep.mubr.f32.mxu0 %v18486_v1 }
 0x2e0   : > { %v8622_v59 = vpop.f32.mrb[0].mxu1 }
 0x2e1   : > { %v17938_v61 = vadd.f32 %v8622_v59, %v254_v57  ;;  %v17665_v62 = vpop.f32.mrb[1].mxu1 }
 0x2e2   : > { %v8175_v0 = vpop.f32.mrb[0].mxu0 }
 0x2e3   : > { %v8631_v2 = vmul.f32 0.01, %v17938_v61  ;;  %v17936_v3 = vadd.f32 %v8175_v0, %v254_v57  ;;  %v8177_v4 = vpop.f32.mrb[1].mxu0 }
 0x2e4   : > { %v17937_v9 = vadd.f32 %v8177_v4, %v254_v57  ;;  %v9704_v57 = vsub.f32 %v9702_v51, %v19348_v53 }
 0x2e5   : > { %v8634_v10 = vmax.f32 %v17938_v61, %v8631_v2  ;;  %v8629_v11 = vmul.f32 0.01, %v17936_v3 }
 0x2e6   : > { %v8630_v14 = vmul.f32 0.01, %v17937_v9  ;;  %v9705_v62 = vand.u32 4294901760, %v9704_v57 }
 0x2e7   : > { %v8632_v15 = vmax.f32 %v17936_v3, %v8629_v11  ;;  %v8654_v16 = vmul.f32 %v8648_v5, %v8634_v10 }
 0x2e8   : > { %v8633_v17 = vmax.f32 %v17937_v9, %v8630_v14 }
 0x2e9   : > { %8668 = vrot.lane.b32.xlu0 %v8654_v16, %s18497_s15  ;;  %v8652_v18 = vmul.f32 %v8640_v12, %v8632_v15 }
 0x2ea   : > { %v8653_v20 = vmul.f32 %v8644_v19, %v8633_v17 }
 0x2eb   : > { %8664 = vrot.lane.b32.xlu1 %v8652_v18, %s18497_s15 }
 0x2ef   : > { %8666 = vrot.lane.b32.xlu1 %v8653_v20, %s18497_s15  ;;  %v17170_v20 = vld [vmem:[%s19852_s3 + $0x10] sm:$0xff]  ;;  %s18498_s15 = smov [#allocation3]  }
 0x2f0   : > { %s18426_s26 = sshll.u32 %s18498_s15, 4  ;;  %s18427_s26 = int_to_ptr.vmem [resolvable:$false] %s18426_s26 }
 0x2f1   : > { %s18428_s28 = scalar_lea.vmem %s18427_s26, 768 }
 0x35b   : > { %v8669_v27 = vpop.permute.xlu0 %8668 }
 0x35d   : > { %v8665_v25 = vpop.permute.xlu1 %8664 }
 0x35e   : > { %8676 = vst.msk [vmem:[#allocation2] sm:$0xff] %vm8675_vm13, %v8665_v25 }
 0x361   : > { %v8667_v28 = vpop.permute.xlu1 %8666 }
 0x362   : > { %v19216_v30 = vsel %vm8655_vm10, %v8665_v25, %v8667_v28  ;;  %v8671_v31 = vsel %vm8655_vm10, %v8667_v28, %v8669_v27 }
 0x363   : > { %8679 = vst.msk [vmem:[#allocation2 + $0x10] sm:$0xff] %vm8678_vm14, %v8671_v31  ;;  %9619 = vrot.lane.b32.xlu1 %v19216_v30, %s18488_s16  ;;  %v19222_v32 = vand.u32 4294901760, %v19216_v30 }
 0x365   : > { %8694 = vmatprep.subr.mxu0 %v19222_v32  ;;  %v19225_v33 = vld [vmem:[#allocation2] sm:$0xff]  ;;  %v8772_v6 = vsub.f32 %v19216_v30, %v19222_v32 }
 0x366   : > { %v19230_v8 = vand.u32 4294901760, %v19225_v33 }
 0x367   : > { %9617 = vrot.lane.b32.xlu1 %v19225_v33, %s18488_s16  ;;  %v8773_v35 = vand.u32 4294901760, %v8772_v6 }
 0x368   : > { %8696 = vmatpush1.msra.mxu0 %v19230_v8  ;;  %v8778_v36 = vsub.f32 %v19225_v33, %v19230_v8 }
 0x369   : > { %8765 = vmatmul.mubr.f32.vlgmr.msra.gmra.mrb[2].mxu0 %v8764_v34  ;;  %v8774_v37 = vsub.f32 %v8772_v6, %v8773_v35 }
 0x36a   : > { %v19237_v38 = vld [vmem:[#allocation2 + $0x10] sm:$0xff]  ;;  %v8779_v39 = vand.u32 4294901760, %v8778_v36  ;;  %8845 = vmatprep.mubr.f32.mxu0 %v18486_v1 }
 0x36b   : > { %9621 = vrot.lane.b32.xlu0 %v19237_v38, %s18488_s16  ;;  %v9159_v40 = vand.u32 4294901760, %v19237_v38  ;;  %10552 = vrot.lane.b32.xlu1 %v19216_v30, %s18489_s17  ;;  %v8775_v41 = vand.u32 4294901760, %v8774_v37 }
 0x36c   : > { %v8780_v42 = vsub.f32 %v8778_v36, %v8779_v39 }
 0x36d   : > { %17667 = vmatpush3.msra.mxu1 %v9159_v40  ;;  %v9236_v43 = vsub.f32 %v19237_v38, %v9159_v40  ;;  %8776 = vmatprep.subr.mxu0 %v8775_v41 }
 0x36e   : > { %17669 = vmatmul.mubr.f32.vlgmr.msra.gmra.mrb[2].mxu1 %v8764_v34  ;;  %17671 = vmatprep.subr.mxu1 %v18486_v1  ;;  %v8781_v44 = vand.u32 4294901760, %v8780_v42 }
 0x36f   : > { %9623 = vrot.lane.b32.xlu0 %v19245_v7, %s18488_s16  ;;  %v9237_v45 = vand.u32 4294901760, %v9236_v43  ;;  %17673 = vmatprep.mubr.msk.f32.mxu1 %vm18487_vm1, %v18486_v1 }
 0x370   : > { %8782 = vmatpush1.msra.mxu0 %v8781_v44  ;;  %10550 = vrot.lane.b32.xlu1 %v19225_v33, %s18489_s17 }
 0x371   : > { %v9238_v46 = vsub.f32 %v9236_v43, %v9237_v45  ;;  %8847 = vmatmul.mubr.f32.vlgmr.msra.gmra.mrb[2].mxu0 %v19205_v23  ;;  %8855 = vmatprep.subr.mxu0 %v8772_v6 }
 0x372   : > { %8858 = vmatpush1.msra.mxu0 %v8778_v36  ;;  %8921 = vmatprep.mubr.f32.mxu0 %v18486_v1 }
 0x373   : > { %10554 = vrot.lane.b32.xlu0 %v19237_v38, %s18489_s17  ;;  %v9239_v47 = vand.u32 4294901760, %v9238_v46  ;;  %8931 = vmatprep.subr.mxu0 %v19222_v32  ;;  %v17171_v46 = vld [vmem:[%s19852_s3 + $0x18] sm:$0xff] }
 0x374   : > { %11485 = vrot.lane.b32.xlu1 %v19216_v30, %s18490_s18  ;;  %v11498_v49 = vsel %vm260_vm0, %v17171_v46, 0 }
 0x375   : > { %17672 = vmatpush3.msra.mxu1 %v9239_v47 }
 0x376   : > { %17674 = vmatmul.mubr.f32.vlgmr.msra.gmra.mrb[2].mxu1 %v19205_v23  ;;  %17676 = vmatprep.subr.mxu1 %v18486_v1 }
 0x377   : > { %10556 = vrot.lane.b32.xlu0 %v19245_v7, %s18489_s17  ;;  %17677 = vmatpush3.msra.mxu1 %v9236_v43 }
 0x378   : > { %17678 = vmatprep.mubr.msk.f32.mxu1 %vm18487_vm1, %v18486_v1  ;;  %17681 = vmatprep.subr.mxu1 %v18486_v1 }
 0x379   : > { %11483 = vrot.lane.b32.xlu1 %v19225_v33, %s18490_s18  ;;  %8924 = vmatmul.mubr.f32.vlgmr.msra.gmra.mrb[2].mxu0 %v19208_v24 }
 0x37a   : > { %8933 = vmatpush1.msra.mxu0 %v19230_v8  ;;  %8996 = vmatprep.mubr.f32.mxu0 %v18486_v1 }
 0x37b   : > { %11487 = vrot.lane.b32.xlu0 %v19237_v38, %s18490_s18  ;;  %9009 = vmatprep.subr.mxu0 %v8773_v35 }
 0x37d   : > { %12418 = vrot.lane.b32.xlu1 %v19216_v30, %s18491_s19 }
 0x37e   : > { %17679 = vmatmul.mubr.f32.vlgmr.msra.gmra.mrb[2].mxu1 %v19208_v24 }
 0x37f   : > { %17682 = vmatpush3.msra.mxu1 %v9159_v40  ;;  %11489 = vrot.lane.b32.xlu0 %v19245_v7, %s18490_s18 }
 0x380   : > { %17683 = vmatprep.mubr.msk.f32.mxu1 %vm18487_vm1, %v18486_v1  ;;  %17686 = vmatprep.subr.mxu1 %v18486_v1 }
 0x381   : > { %12416 = vrot.lane.b32.xlu1 %v19225_v33, %s18491_s19  ;;  %9000 = vmatmul.mubr.f32.vlgmr.msra.gmra.mrb[2].mxu0 %v19211_v26 }
 0x382   : > { %9013 = vmatpush1.msra.mxu0 %v8779_v39  ;;  %9076 = vmatprep.mubr.f32.mxu0 %v18486_v1 }
 0x383   : > { %12420 = vrot.lane.b32.xlu0 %v19237_v38, %s18491_s19  ;;  %9085 = vmatprep.subr.mxu0 %v19222_v32 }
 0x385   : > { %13351 = vrot.lane.b32.xlu1 %v19216_v30, %s18492_s20 }
 0x386   : > { %17684 = vmatmul.mubr.f32.vlgmr.msra.gmra.mrb[2].mxu1 %v19211_v26 }
 0x387   : > { %17687 = vmatpush3.msra.mxu1 %v9237_v45  ;;  %12422 = vrot.lane.b32.xlu0 %v19245_v7, %s18491_s19  ;;  %s242_s19 = sand.u32 1, %s18476_s22  }
 0x388   : > { %17688 = vmatprep.mubr.msk.f32.mxu1 %vm18487_vm1, %v18486_v1  ;;  %17691 = vmatprep.subr.mxu1 %v18486_v1 }
 0x389   : > { %13349 = vrot.lane.b32.xlu1 %v19225_v33, %s18492_s20  ;;  %9078 = vmatmul.mubr.f32.vlgmr.msra.gmra.mrb[2].mxu0 %v19205_v23 }
 0x38a   : > { %9087 = vmatpush1.msra.mxu0 %v19230_v8  ;;  %9150 = vmatprep.mubr.f32.mxu0 %v18486_v1 }
 0x38b   : > { %13353 = vrot.lane.b32.xlu0 %v19237_v38, %s18492_s20 }
 0x38d   : > { %14284 = vrot.lane.b32.xlu1 %v19216_v30, %s18493_s29 }
 0x38e   : > { %17689 = vmatmul.mubr.f32.vlgmr.msra.gmra.mrb[2].mxu1 %v19205_v23 }
 0x38f   : > { %17692 = vmatpush3.msra.mxu1 %v9159_v40  ;;  %13355 = vrot.lane.b32.xlu0 %v19245_v7, %s18492_s20  ;;  %s18366_s20 = smul.u32 24, %s242_s19 }
 0x390   : > { %17693 = vmatprep.mubr.msk.f32.mxu1 %vm18487_vm1, %v18486_v1  ;;  %17696 = vmatprep.subr.mxu1 %v18486_v1 }
 0x391   : > { %14282 = vrot.lane.b32.xlu1 %v19225_v33, %s18493_s29  ;;  %9152 = vmatmul.mubr.f32.vlgmr.msra.gmra.mrb[2].mxu0 %v19205_v23 }
 0x392   : > { %9700 = vmatprep.mubr.f32.mxu0 %v18486_v1 }
 0x393   : > { %14286 = vrot.lane.b32.xlu0 %v19237_v38, %s18493_s29 }
 0x395   : > { %15217 = vrot.lane.b32.xlu1 %v19216_v30, %s18494_s11 }
 0x396   : > { %17694 = vmatmul.mubr.f32.vlgmr.msra.gmra.mrb[2].mxu1 %v19205_v23  ;;  %v10565_v23 = vsel %vm260_vm0, %v17170_v20, 0 }
 0x397   : > { %14288 = vrot.lane.b32.xlu0 %v19245_v7, %s18493_s29  ;;  %17698 = vmatprep.mubr.msk.f32.mxu1 %vm18487_vm1, %v18486_v1  ;;  %v19393_v27 = vand.u32 4294901760, %v10565_v23  ;;  %s18368_s29 = smul.u32 384, %s18555_s25  ;;  %s17083_s25 = scalar_lea.sflag [#allocation4], %s242_s19 }
 0x399   : > { %15215 = vrot.lane.b32.xlu1 %v19225_v33, %s18494_s11  ;;  %v10635_v31 = vsub.f32 %v10565_v23, %v19393_v27  ;;  %s19807_s12 = scalar_lea.hbm %s19855_s6, %s18368_s29 }
 0x39b   : > { %15219 = vrot.lane.b32.xlu0 %v19237_v38, %s18494_s11  ;;  %v10636_v6 = vand.u32 4294901760, %v10635_v31 }
 0x39d   : > { %16150 = vrot.lane.b32.xlu1 %v19216_v30, %s18495_s14  ;;  %v10637_v37 = vsub.f32 %v10635_v31, %v10636_v6 }
 0x39f   : > { %15221 = vrot.lane.b32.xlu0 %v19245_v7, %s18494_s11  ;;  %v10638_v40 = vand.u32 4294901760, %v10637_v37  ;;  %s244_s11 = scalar_lea.vmem [#allocation3], %s18366_s20 }
 0x3a1   : > { %16148 = vrot.lane.b32.xlu1 %v19225_v33, %s18495_s14 }
 0x3a3   : > { %16152 = vrot.lane.b32.xlu0 %v19237_v38, %s18495_s14 }
 0x3a7   : > { %16154 = vrot.lane.b32.xlu0 %v19245_v7, %s18495_s14  ;;  %s17097_s14 = sshll.u32 %s244_s11, 4  ;;  %s19809_s14 = int_to_ptr.vmem [resolvable:$true] %s17097_s14 }
 0x3a8   : > { %s18422_s13 = scalar_lea.vmem %s19809_s14, 384  ;;  %p18429_p0 = scmp.lt.s32.totalorder %s19809_s14, %s18427_s26 }
 0x3a9   : > { %p18423_p11 = scmp.ne.s32.totalorder %s19809_s14, %s18422_s13  ;;  %p18430_p1 = scmp.lt.s32.totalorder %s18428_s28, %s18422_s13 }
 0x3ab   : > { %p18424_p12 = pnand %p18423_p11, %p18572_p5  ;;  %p18431_p2 = por %p18430_p1, %p18429_p0 }
 0x3ad   : > { %p18425_p13 = pneg %p18424_p12 }
 0x3af   : > { %p18432_p3 = pnand %p18431_p2, %p18425_p13 }
 0x3d5   : > { %v9620_v52 = vpop.permute.xlu1 %9619 }
 0x3d9   : > { %v9618_v54 = vpop.permute.xlu1 %9617 }
 0x3da   : > { %v9625_v55 = vsel %vm1189_vm2, %v9618_v54, %v9620_v52 }
 0x3db   : > { %v19351_v56 = vand.u32 4294901760, %v9625_v55 }
 0x3dd   : > { %v9622_v58 = vpop.permute.xlu0 %9621  ;;  %v9719_v59 = vsub.f32 %v9625_v55, %v19351_v56  ;;  %v10553_v18 = vpop.permute.xlu1 %10552 }
 0x3de   : > { %v9626_v60 = vsel %vm1189_vm2, %v9620_v52, %v9622_v58 }
 0x3df   : > { %v9634_v61 = vand.u32 4294901760, %v9626_v60  ;;  %v9720_v63 = vand.u32 4294901760, %v9719_v59 }
 0x3e1   : > { %v9713_v0 = vsub.f32 %v9626_v60, %v9634_v61  ;;  %v9624_v2 = vpop.permute.xlu0 %9623  ;;  %9635 = vmatprep.subr.mxu0 %v9634_v61  ;;  %v9721_v9 = vsub.f32 %v9719_v59, %v9720_v63 }
 0x3e2   : > { %v9627_v3 = vsel %vm1189_vm2, %v9622_v58, %v9624_v2  ;;  %9637 = vmatpush1.msra.mxu0 %v19351_v56  ;;  %v10551_v22 = vpop.permute.xlu1 %10550 }
 0x3e3   : > { %v19358_v4 = vand.u32 4294901760, %v9627_v3  ;;  %9706 = vmatmul.mubr.f32.vlgmr.msra.gmra.mrb[2].mxu0 %v9705_v62  ;;  %v9714_v5 = vand.u32 4294901760, %v9713_v0  ;;  %v9722_v14 = vand.u32 4294901760, %v9721_v9  ;;  %v10558_v26 = vsel %vm2120_vm3, %v10551_v22, %v10553_v18 }
 0x3e4   : > { %9786 = vmatprep.mubr.f32.mxu0 %v18486_v1  ;;  %v19397_v29 = vand.u32 4294901760, %v10558_v26 }
 0x3e5   : > { %v10177_v10 = vsub.f32 %v9627_v3, %v19358_v4  ;;  %17697 = vmatpush3.msra.mxu1 %v19358_v4  ;;  %v9715_v11 = vsub.f32 %v9713_v0, %v9714_v5  ;;  %v10555_v17 = vpop.permute.xlu0 %10554 }
 0x3e6   : > { %17699 = vmatmul.mubr.f32.vlgmr.msra.gmra.mrb[2].mxu1 %v9705_v62  ;;  %17701 = vmatprep.subr.mxu1 %v18486_v1  ;;  %v10559_v19 = vsel %vm2120_vm3, %v10553_v18, %v10555_v17  ;;  %v10652_v33 = vsub.f32 %v10558_v26, %v19397_v29  ;;  %v11486_v44 = vpop.permute.xlu1 %11485 }
 0x3e7   : > { %v10178_v12 = vand.u32 4294901760, %v10177_v10  ;;  %v9716_v13 = vand.u32 4294901760, %v9715_v11  ;;  %17703 = vmatprep.mubr.msk.f32.mxu1 %vm18487_vm1, %v18486_v1  ;;  %v19383_v21 = vand.u32 4294901760, %v10559_v19 }
 0x3e8   : > { %v10653_v35 = vand.u32 4294901760, %v10652_v33 }
 0x3e9   : > { %v10179_v15 = vsub.f32 %v10177_v10, %v10178_v12  ;;  %9717 = vmatprep.subr.mxu0 %v9716_v13  ;;  %v10646_v24 = vsub.f32 %v10559_v19, %v19383_v21  ;;  %v10557_v25 = vpop.permute.xlu0 %10556 }
 0x3ea   : > { %9723 = vmatpush1.msra.mxu0 %v9722_v14  ;;  %v10560_v28 = vsel %vm2120_vm3, %v10555_v17, %v10557_v25  ;;  %v10654_v39 = vsub.f32 %v10652_v33, %v10653_v35 }
 0x3eb   : > { %v10180_v16 = vand.u32 4294901760, %v10179_v15  ;;  %9788 = vmatmul.mubr.f32.vlgmr.msra.gmra.mrb[2].mxu0 %v19345_v50  ;;  %9796 = vmatprep.subr.mxu0 %v9713_v0  ;;  %v10647_v30 = vand.u32 4294901760, %v10646_v24  ;;  %v19403_v32 = vand.u32 4294901760, %v10560_v28  ;;  %v11484_v48 = vpop.permute.xlu1 %11483  ;;  %v17172_v15 = vld [vmem:[%s19852_s3 + $0x20] sm:$0xff] }
 0x3ec   : > { %9799 = vmatpush1.msra.mxu0 %v9719_v59  ;;  %9862 = vmatprep.mubr.f32.mxu0 %v18486_v1  ;;  %v10655_v7 = vand.u32 4294901760, %v10654_v39  ;;  %v11491_v52 = vsel %vm3051_vm4, %v11484_v48, %v11486_v44  ;;  %v12431_v18 = vsel %vm260_vm0, %v17172_v15, 0 }
 0x3ed   : > { %17702 = vmatpush3.msra.mxu1 %v10180_v16  ;;  %9872 = vmatprep.subr.mxu0 %v9634_v61  ;;  %v10648_v34 = vsub.f32 %v10646_v24, %v10647_v30  ;;  %v11110_v8 = vsub.f32 %v10560_v28, %v19403_v32  ;;  %v11488_v43 = vpop.permute.xlu0 %11487  ;;  %v19455_v55 = vand.u32 4294901760, %v11491_v52  ;;  %v19509_v22 = vand.u32 4294901760, %v12431_v18 }
 0x3ee   : > { %17704 = vmatmul.mubr.f32.vlgmr.msra.gmra.mrb[2].mxu1 %v19345_v50  ;;  %17706 = vmatprep.subr.mxu1 %v18486_v1  ;;  %v11492_v45 = vsel %vm3051_vm4, %v11486_v44, %v11488_v43 }
 0x3ef   : > { %17707 = vmatpush3.msra.mxu1 %v10177_v10  ;;  %17708 = vmatprep.mubr.msk.f32.mxu1 %vm18487_vm1, %v18486_v1  ;;  %v10649_v36 = vand.u32 4294901760, %v10648_v34  ;;  %v11111_v38 = vand.u32 4294901760, %v11110_v8  ;;  %v19442_v47 = vand.u32 4294901760, %v11492_v45  ;;  %v11585_v59 = vsub.f32 %v11491_v52, %v19455_v55  ;;  %v12419_v13 = vpop.permute.xlu1 %12418 }
 0x3f0   : > { %17711 = vmatprep.subr.mxu1 %v18486_v1  ;;  %v12501_v26 = vsub.f32 %v12431_v18, %v19509_v22 }
 0x3f1   : > { %v11112_v41 = vsub.f32 %v11110_v8, %v11111_v38 }
 0x3f3   : > { %9865 = vmatmul.mubr.f32.vlgmr.msra.gmra.mrb[2].mxu0 %v9702_v51  ;;  %v11113_v42 = vand.u32 4294901760, %v11112_v41  ;;  %v12417_v17 = vpop.permute.xlu1 %12416 }
 0x3f4   : > { %9874 = vmatpush1.msra.mxu0 %v19351_v56  ;;  %9937 = vmatprep.mubr.f32.mxu0 %v18486_v1 }
 0x3f5   : > { %9950 = vmatprep.subr.mxu0 %v9714_v5 }
 0x3f6   : > { %17709 = vmatmul.mubr.f32.vlgmr.msra.gmra.mrb[2].mxu1 %v9702_v51  ;;  %v11490_v51 = vpop.permute.xlu0 %11489 }
 0x3f7   : > { %17712 = vmatpush3.msra.mxu1 %v19358_v4  ;;  %17713 = vmatprep.mubr.msk.f32.mxu1 %vm18487_vm1, %v18486_v1  ;;  %v11493_v54 = vsel %vm3051_vm4, %v11488_v43, %v11490_v51 }
 0x3f8   : > { %17716 = vmatprep.subr.mxu1 %v18486_v1  ;;  %v19461_v58 = vand.u32 4294901760, %v11493_v54 }
 0x3fa   : > { %v12043_v62 = vsub.f32 %v11493_v54, %v19461_v58 }
 0x3fb   : > { %9941 = vmatmul.mubr.f32.vlgmr.msra.gmra.mrb[2].mxu0 %v19348_v53 }
 0x3fc   : > { %9954 = vmatpush1.msra.mxu0 %v9720_v63  ;;  %10017 = vmatprep.mubr.f32.mxu0 %v18486_v1  ;;  %v11586_v63 = vand.u32 4294901760, %v11585_v59  ;;  %v12044_v3 = vand.u32 4294901760, %v12043_v62 }
 0x3fd   : > { %10026 = vmatprep.subr.mxu0 %v9634_v61 }
 0x3fe   : > { %17714 = vmatmul.mubr.f32.vlgmr.msra.gmra.mrb[2].mxu1 %v19348_v53  ;;  %v19451_v53 = vand.u32 4294901760, %v11498_v49  ;;  %v12045_v9 = vsub.f32 %v12043_v62, %v12044_v3 }
 0x3ff   : > { %17717 = vmatpush3.msra.mxu1 %v10178_v12  ;;  %17718 = vmatprep.mubr.msk.f32.mxu1 %vm18487_vm1, %v18486_v1  ;;  %v12421_v12 = vpop.permute.xlu0 %12420 }
 0x400   : > { %17721 = vmatprep.subr.mxu1 %v18486_v1  ;;  %v11568_v57 = vsub.f32 %v11498_v49, %v19451_v53  ;;  %v12046_v11 = vand.u32 4294901760, %v12045_v9  ;;  %v12425_v14 = vsel %vm3982_vm5, %v12419_v13, %v12421_v12 }
 0x401   : > { %v19500_v16 = vand.u32 4294901760, %v12425_v14 }
 0x402   : > { %v11569_v61 = vand.u32 4294901760, %v11568_v57 }
 0x403   : > { %10019 = vmatmul.mubr.f32.vlgmr.msra.gmra.mrb[2].mxu0 %v19345_v50  ;;  %v12512_v19 = vsub.f32 %v12425_v14, %v19500_v16  ;;  %v12423_v20 = vpop.permute.xlu0 %12422 }
 0x404   : > { %10028 = vmatpush1.msra.mxu0 %v19351_v56  ;;  %10091 = vmatprep.mubr.f32.mxu0 %v18486_v1  ;;  %v11570_v2 = vsub.f32 %v11568_v57, %v11569_v61  ;;  %v12426_v23 = vsel %vm3982_vm5, %v12421_v12, %v12423_v20 }
 0x405   : > { %10568 = vmatprep.subr.mxu0 %v19383_v21  ;;  %v12513_v25 = vand.u32 4294901760, %v12512_v19 }
 0x406   : > { %17719 = vmatmul.mubr.f32.vlgmr.msra.gmra.mrb[2].mxu1 %v19345_v50  ;;  %v11571_v5 = vand.u32 4294901760, %v11570_v2 }
 0x407   : > { %17722 = vmatpush3.msra.mxu1 %v19358_v4  ;;  %17723 = vmatprep.mubr.msk.f32.mxu1 %vm18487_vm1, %v18486_v1  ;;  %v11587_v4 = vsub.f32 %v11585_v59, %v11586_v63  ;;  %v13354_v39 = vpop.permute.xlu0 %13353 }
 0x408   : > { %17726 = vmatprep.subr.mxu1 %v18486_v1 }
 0x409   : > { %v11588_v10 = vand.u32 4294901760, %v11587_v4 }
 0x40b   : > { %10093 = vmatmul.mubr.f32.vlgmr.msra.gmra.mrb[2].mxu0 %v19345_v50  ;;  %v13356_v46 = vpop.permute.xlu0 %13355 }
 0x40c   : > { %10570 = vmatpush1.msra.mxu0 %v19397_v29  ;;  %10633 = vmatprep.mubr.f32.mxu0 %v18486_v1  ;;  %v13359_v49 = vsel %vm4913_vm6, %v13354_v39, %v13356_v46 }
 0x40d   : > { %10650 = vmatprep.subr.mxu0 %v10649_v36 }
 0x40e   : > { %17724 = vmatmul.mubr.f32.vlgmr.msra.gmra.mrb[2].mxu1 %v19345_v50  ;;  %v11579_v50 = vsub.f32 %v11492_v45, %v19442_v47 }
 0x40f   : > { %17727 = vmatpush3.msra.mxu1 %v19403_v32  ;;  %17728 = vmatprep.mubr.msk.f32.mxu1 %vm18487_vm1, %v18486_v1  ;;  %v14287_v4 = vpop.permute.xlu0 %14286 }
 0x410   : > { %17731 = vmatprep.subr.mxu1 %v18486_v1  ;;  %v11580_v56 = vand.u32 4294901760, %v11579_v50 }
 0x412   : > { %v11581_v60 = vsub.f32 %v11579_v50, %v11580_v56 }
 0x413   : > { %10639 = vmatmul.mubr.f32.vlgmr.msra.gmra.mrb[2].mxu0 %v10638_v40  ;;  %v14289_v15 = vpop.permute.xlu0 %14288 }
 0x414   : > { %10656 = vmatpush1.msra.mxu0 %v10655_v7  ;;  %10719 = vmatprep.mubr.f32.mxu0 %v18486_v1  ;;  %v11582_v0 = vand.u32 4294901760, %v11581_v60  ;;  %v17173_v7 = vld [vmem:[%s19852_s3 + $0x28] sm:$0xff]  ;;  %v14292_v18 = vsel %vm5844_vm7, %v14287_v4, %v14289_v15 }
 0x415   : > { %10729 = vmatprep.subr.mxu0 %v10646_v24  ;;  %v13364_v44 = vsel %vm260_vm0, %v17173_v7, 0 }
 0x416   : > { %17729 = vmatmul.mubr.f32.vlgmr.msra.gmra.mrb[2].mxu1 %v10638_v40  ;;  %v13352_v40 = vpop.permute.xlu1 %13351  ;;  %v19567_v48 = vand.u32 4294901760, %v13364_v44 }
 0x417   : > { %17732 = vmatpush3.msra.mxu1 %v11113_v42  ;;  %17733 = vmatprep.mubr.msk.f32.mxu1 %vm18487_vm1, %v18486_v1  ;;  %v13358_v41 = vsel %vm4913_vm6, %v13352_v40, %v13354_v39 }
 0x418   : > { %17736 = vmatprep.subr.mxu1 %v18486_v1  ;;  %v19558_v42 = vand.u32 4294901760, %v13358_v41  ;;  %v13434_v52 = vsub.f32 %v13364_v44, %v19567_v48 }
 0x41a   : > { %v13350_v43 = vpop.permute.xlu1 %13349  ;;  %v13445_v45 = vsub.f32 %v13358_v41, %v19558_v42 }
 0x41b   : > { %10721 = vmatmul.mubr.f32.vlgmr.msra.gmra.mrb[2].mxu0 %v19393_v27 }
 0x41c   : > { %10732 = vmatpush1.msra.mxu0 %v10652_v33  ;;  %10795 = vmatprep.mubr.f32.mxu0 %v18486_v1  ;;  %v13446_v51 = vand.u32 4294901760, %v13445_v45 }
 0x41d   : > { %10805 = vmatprep.subr.mxu0 %v19383_v21 }
 0x41e   : > { %17734 = vmatmul.mubr.f32.vlgmr.msra.gmra.mrb[2].mxu1 %v19393_v27 }
 0x41f   : > { %17737 = vmatpush3.msra.mxu1 %v11110_v8  ;;  %17738 = vmatprep.mubr.msk.f32.mxu1 %vm18487_vm1, %v18486_v1 }
 0x420   : > { %17741 = vmatprep.subr.mxu1 %v18486_v1 }
 0x423   : > { %10798 = vmatmul.mubr.f32.vlgmr.msra.gmra.mrb[2].mxu0 %v10635_v31 }
 0x424   : > { %10807 = vmatpush1.msra.mxu0 %v19397_v29  ;;  %10870 = vmatprep.mubr.f32.mxu0 %v18486_v1 }
 0x425   : > { %10883 = vmatprep.subr.mxu0 %v10647_v30  ;;  %v12502_v30 = vand.u32 4294901760, %v12501_v26 }
 0x426   : > { %17739 = vmatmul.mubr.f32.vlgmr.msra.gmra.mrb[2].mxu1 %v10635_v31 }
 0x427   : > { %17742 = vmatpush3.msra.mxu1 %v19403_v32  ;;  %17743 = vmatprep.mubr.msk.f32.mxu1 %vm18487_vm1, %v18486_v1  ;;  %v12503_v34 = vsub.f32 %v12501_v26, %v12502_v30 }
 0x428   : > { %17746 = vmatprep.subr.mxu1 %v18486_v1 }
 0x42b   : > { %10874 = vmatmul.mubr.f32.vlgmr.msra.gmra.mrb[2].mxu0 %v10636_v6 }
 0x42c   : > { %10887 = vmatpush1.msra.mxu0 %v10653_v35  ;;  %10950 = vmatprep.mubr.f32.mxu0 %v18486_v1  ;;  %v12504_v35 = vand.u32 4294901760, %v12503_v34 }
 0x42d   : > { %10959 = vmatprep.subr.mxu0 %v19383_v21  ;;  %v12424_v21 = vsel %vm3982_vm5, %v12417_v17, %v12419_v13 }
 0x42e   : > { %17744 = vmatmul.mubr.f32.vlgmr.msra.gmra.mrb[2].mxu1 %v10636_v6  ;;  %v19513_v24 = vand.u32 4294901760, %v12424_v21 }
 0x42f   : > { %17747 = vmatpush3.msra.mxu1 %v11111_v38  ;;  %17748 = vmatprep.mubr.msk.f32.mxu1 %vm18487_vm1, %v18486_v1 }
 0x430   : > { %17751 = vmatprep.subr.mxu1 %v18486_v1  ;;  %v12518_v28 = vsub.f32 %v12424_v21, %v19513_v24 }
 0x433   : > { %10952 = vmatmul.mubr.f32.vlgmr.msra.gmra.mrb[2].mxu0 %v19393_v27 }
 0x434   : > { %10961 = vmatpush1.msra.mxu0 %v19397_v29  ;;  %11024 = vmatprep.mubr.f32.mxu0 %v18486_v1  ;;  %v12514_v29 = vsub.f32 %v12512_v19, %v12513_v25 }
 0x435   : > { %11501 = vmatprep.subr.mxu0 %v19442_v47 }
 0x436   : > { %17749 = vmatmul.mubr.f32.vlgmr.msra.gmra.mrb[2].mxu1 %v19393_v27  ;;  %v12515_v33 = vand.u32 4294901760, %v12514_v29 }
 0x437   : > { %17752 = vmatpush3.msra.mxu1 %v19403_v32  ;;  %17753 = vmatprep.mubr.msk.f32.mxu1 %vm18487_vm1, %v18486_v1  ;;  %v12519_v32 = vand.u32 4294901760, %v12518_v28 }
 0x438   : > { %17756 = vmatprep.subr.mxu1 %v18486_v1 }
 0x439   : > { %v12520_v8 = vsub.f32 %v12518_v28, %v12519_v32 }
 0x43b   : > { %11026 = vmatmul.mubr.f32.vlgmr.msra.gmra.mrb[2].mxu0 %v19393_v27  ;;  %v12521_v37 = vand.u32 4294901760, %v12520_v8  ;;  %v8680_v8 = vld [vmem:[%s19853_s4] sm:$0xff] }
 0x43c   : > { %11503 = vmatpush1.msra.mxu0 %v19455_v55  ;;  %11566 = vmatprep.mubr.f32.mxu0 %v18486_v1 }
 0x43d   : > { %11583 = vmatprep.subr.mxu0 %v11582_v0  ;;  %8683 = vperm.xlu1 %18421, %v8680_v8  }
 0x43e   : > { %17754 = vmatmul.mubr.f32.vlgmr.msra.gmra.mrb[2].mxu1 %v19393_v27  ;;  %v19519_v27 = vand.u32 4294901760, %v12426_v23 }
 0x43f   : > { %17757 = vmatpush3.msra.mxu1 %v19461_v58  ;;  %17758 = vmatprep.mubr.msk.f32.mxu1 %vm18487_vm1, %v18486_v1 }
 0x440   : > { %17761 = vmatprep.subr.mxu1 %v18486_v1  ;;  %v12976_v31 = vsub.f32 %v12426_v23, %v19519_v27 }
 0x442   : > { %v12977_v6 = vand.u32 4294901760, %v12976_v31 }
 0x443   : > { %11572 = vmatmul.mubr.f32.vlgmr.msra.gmra.mrb[2].mxu0 %v11571_v5 }
 0x444   : > { %11589 = vmatpush1.msra.mxu0 %v11588_v10  ;;  %11652 = vmatprep.mubr.f32.mxu0 %v18486_v1  ;;  %v12978_v36 = vsub.f32 %v12976_v31, %v12977_v6  ;;  %v17174_v10 = vld [vmem:[%s19852_s3 + $0x30] sm:$0xff] }
 0x445   : > { %11662 = vmatprep.subr.mxu0 %v11579_v50  ;;  %v14297_v13 = vsel %vm260_vm0, %v17174_v10, 0 }
 0x446   : > { %17759 = vmatmul.mubr.f32.vlgmr.msra.gmra.mrb[2].mxu1 %v11571_v5  ;;  %v12979_v38 = vand.u32 4294901760, %v12978_v36  ;;  %v14285_v5 = vpop.permute.xlu1 %14284  ;;  %v19627_v17 = vand.u32 4294901760, %v14297_v13 }
 0x447   : > { %17762 = vmatpush3.msra.mxu1 %v12046_v11  ;;  %17763 = vmatprep.mubr.msk.f32.mxu1 %vm18487_vm1, %v18486_v1  ;;  %v14291_v9 = vsel %vm5844_vm7, %v14285_v5, %v14287_v4 }
 0x448   : > { %17766 = vmatprep.subr.mxu1 %v18486_v1  ;;  %v19616_v11 = vand.u32 4294901760, %v14291_v9  ;;  %v14367_v21 = vsub.f32 %v14297_v13, %v19627_v17 }
 0x44a   : > { %v14283_v12 = vpop.permute.xlu1 %14282  ;;  %v19622_v14 = vsub.f32 %v14291_v9, %v19616_v11 }
 0x44b   : > { %11654 = vmatmul.mubr.f32.vlgmr.msra.gmra.mrb[2].mxu0 %v19451_v53 }
 0x44c   : > { %11665 = vmatpush1.msra.mxu0 %v11585_v59  ;;  %11728 = vmatprep.mubr.f32.mxu0 %v18486_v1  ;;  %v14379_v20 = vand.u32 4294901760, %v19622_v14 }
 0x44d   : > { %11738 = vmatprep.subr.mxu0 %v19442_v47 }
 0x44e   : > { %17764 = vmatmul.mubr.f32.vlgmr.msra.gmra.mrb[2].mxu1 %v19451_v53  ;;  %v15218_v36 = vpop.permute.xlu1 %15217 }
 0x44f   : > { %17767 = vmatpush3.msra.mxu1 %v12043_v62  ;;  %17768 = vmatprep.mubr.msk.f32.mxu1 %vm18487_vm1, %v18486_v1 }
 0x450   : > { %17771 = vmatprep.subr.mxu1 %v18486_v1 }
 0x453   : > { %11731 = vmatmul.mubr.f32.vlgmr.msra.gmra.mrb[2].mxu0 %v11568_v57 }
 0x454   : > { %11740 = vmatpush1.msra.mxu0 %v19455_v55  ;;  %11803 = vmatprep.mubr.f32.mxu0 %v18486_v1 }
 0x455   : > { %11816 = vmatprep.subr.mxu0 %v11580_v56  ;;  %v13435_v56 = vand.u32 4294901760, %v13434_v52 }
 0x456   : > { %17769 = vmatmul.mubr.f32.vlgmr.msra.gmra.mrb[2].mxu1 %v11568_v57 }
 0x457   : > { %17772 = vmatpush3.msra.mxu1 %v19461_v58  ;;  %17773 = vmatprep.mubr.msk.f32.mxu1 %vm18487_vm1, %v18486_v1  ;;  %v13436_v60 = vsub.f32 %v13434_v52, %v13435_v56 }
 0x458   : > { %17776 = vmatprep.subr.mxu1 %v18486_v1 }
 0x45b   : > { %11807 = vmatmul.mubr.f32.vlgmr.msra.gmra.mrb[2].mxu0 %v11569_v61 }
 0x45c   : > { %11820 = vmatpush1.msra.mxu0 %v11586_v63  ;;  %11883 = vmatprep.mubr.f32.mxu0 %v18486_v1  ;;  %v13437_v63 = vand.u32 4294901760, %v13436_v60 }
 0x45d   : > { %11892 = vmatprep.subr.mxu0 %v19442_v47  ;;  %v13357_v47 = vsel %vm4913_vm6, %v13350_v43, %v13352_v40  ;;  %v15216_v40 = vpop.permute.xlu1 %15215 }
 0x45e   : > { %17774 = vmatmul.mubr.f32.vlgmr.msra.gmra.mrb[2].mxu1 %v11569_v61  ;;  %v19571_v50 = vand.u32 4294901760, %v13357_v47  ;;  %v15223_v43 = vsel %vm6775_vm8, %v15216_v40, %v15218_v36 }
 0x45f   : > { %17777 = vmatpush3.msra.mxu1 %v12044_v3  ;;  %17778 = vmatprep.mubr.msk.f32.mxu1 %vm18487_vm1, %v18486_v1  ;;  %v19695_v46 = vand.u32 4294901760, %v15223_v43 }
 0x460   : > { %17781 = vmatprep.subr.mxu1 %v18486_v1  ;;  %v13451_v54 = vsub.f32 %v13357_v47, %v19571_v50 }
 0x463   : > { %11885 = vmatmul.mubr.f32.vlgmr.msra.gmra.mrb[2].mxu0 %v19451_v53 }
 0x464   : > { %11894 = vmatpush1.msra.mxu0 %v19455_v55  ;;  %11957 = vmatprep.mubr.f32.mxu0 %v18486_v1  ;;  %v13447_v55 = vsub.f32 %v13445_v45, %v13446_v51 }
 0x465   : > { %12434 = vmatprep.subr.mxu0 %v19500_v16 }
 0x466   : > { %17779 = vmatmul.mubr.f32.vlgmr.msra.gmra.mrb[2].mxu1 %v19451_v53  ;;  %v13448_v59 = vand.u32 4294901760, %v13447_v55 }
 0x467   : > { %17782 = vmatpush3.msra.mxu1 %v19461_v58  ;;  %17783 = vmatprep.mubr.msk.f32.mxu1 %vm18487_vm1, %v18486_v1  ;;  %v13452_v58 = vand.u32 4294901760, %v13451_v54 }
 0x468   : > { %17786 = vmatprep.subr.mxu1 %v18486_v1 }
 0x469   : > { %v13453_v62 = vsub.f32 %v13451_v54, %v13452_v58 }
 0x46b   : > { %11959 = vmatmul.mubr.f32.vlgmr.msra.gmra.mrb[2].mxu0 %v19451_v53  ;;  %v13454_v2 = vand.u32 4294901760, %v13453_v62 }
 0x46c   : > { %12436 = vmatpush1.msra.mxu0 %v19513_v24  ;;  %12499 = vmatprep.mubr.f32.mxu0 %v18486_v1 }
 0x46d   : > { %12516 = vmatprep.subr.mxu0 %v12515_v33 }
 0x46e   : > { %17784 = vmatmul.mubr.f32.vlgmr.msra.gmra.mrb[2].mxu1 %v19451_v53  ;;  %v19577_v53 = vand.u32 4294901760, %v13359_v49 }
 0x46f   : > { %17787 = vmatpush3.msra.mxu1 %v19519_v27  ;;  %17788 = vmatprep.mubr.msk.f32.mxu1 %vm18487_vm1, %v18486_v1 }
 0x470   : > { %17791 = vmatprep.subr.mxu1 %v18486_v1  ;;  %v13909_v57 = vsub.f32 %v13359_v49, %v19577_v53 }
 0x472   : > { %v13910_v61 = vand.u32 4294901760, %v13909_v57 }
 0x473   : > { %12505 = vmatmul.mubr.f32.vlgmr.msra.gmra.mrb[2].mxu0 %v12504_v35 }
 0x474   : > { %12522 = vmatpush1.msra.mxu0 %v12521_v37  ;;  %12585 = vmatprep.mubr.f32.mxu0 %v18486_v1  ;;  %v13911_v0 = vsub.f32 %v13909_v57, %v13910_v61 }
 0x475   : > { %12595 = vmatprep.subr.mxu0 %v12512_v19 }
 0x476   : > { %17789 = vmatmul.mubr.f32.vlgmr.msra.gmra.mrb[2].mxu1 %v12504_v35  ;;  %v13912_v3 = vand.u32 4294901760, %v13911_v0  ;;  %v15220_v35 = vpop.permute.xlu0 %15219  ;;  %v16151_v0 = vpop.permute.xlu1 %16150 }
 0x477   : > { %17792 = vmatpush3.msra.mxu1 %v12979_v38  ;;  %17793 = vmatprep.mubr.msk.f32.mxu1 %vm18487_vm1, %v18486_v1  ;;  %v15224_v37 = vsel %vm6775_vm8, %v15218_v36, %v15220_v35  ;;  %v17175_v38 = vld [vmem:[%s19852_s3 + $0x38] sm:$0xff] }
 0x478   : > { %17796 = vmatprep.subr.mxu1 %v18486_v1  ;;  %v19682_v39 = vand.u32 4294901760, %v15224_v37  ;;  %v15230_v41 = vsel %vm260_vm0, %v17175_v38, 0 }
 0x479   : > { %v19691_v44 = vand.u32 4294901760, %v15230_v41 }
 0x47a   : > { %v15311_v7 = vsub.f32 %v15224_v37, %v19682_v39 }
 0x47b   : > { %12587 = vmatmul.mubr.f32.vlgmr.msra.gmra.mrb[2].mxu0 %v19509_v22 }
 0x47c   : > { %12598 = vmatpush1.msra.mxu0 %v12518_v28  ;;  %12661 = vmatprep.mubr.f32.mxu0 %v18486_v1  ;;  %v15312_v47 = vand.u32 4294901760, %v15311_v7 }
 0x47d   : > { %12671 = vmatprep.subr.mxu0 %v19500_v16 }
 0x47e   : > { %17794 = vmatmul.mubr.f32.vlgmr.msra.gmra.mrb[2].mxu1 %v19509_v22 }
 0x47f   : > { %17797 = vmatpush3.msra.mxu1 %v12976_v31  ;;  %17798 = vmatprep.mubr.msk.f32.mxu1 %vm18487_vm1, %v18486_v1 }
 0x480   : > { %17801 = vmatprep.subr.mxu1 %v18486_v1 }
 0x483   : > { %12664 = vmatmul.mubr.f32.vlgmr.msra.gmra.mrb[2].mxu0 %v12501_v26 }
 0x484   : > { %12673 = vmatpush1.msra.mxu0 %v19513_v24  ;;  %12736 = vmatprep.mubr.f32.mxu0 %v18486_v1 }
 0x485   : > { %12749 = vmatprep.subr.mxu0 %v12513_v25  ;;  %v14368_v25 = vand.u32 4294901760, %v14367_v21 }
 0x486   : > { %17799 = vmatmul.mubr.f32.vlgmr.msra.gmra.mrb[2].mxu1 %v12501_v26 }
 0x487   : > { %17802 = vmatpush3.msra.mxu1 %v19519_v27  ;;  %17803 = vmatprep.mubr.msk.f32.mxu1 %vm18487_vm1, %v18486_v1  ;;  %v14369_v29 = vsub.f32 %v14367_v21, %v14368_v25 }
 0x488   : > { %17806 = vmatprep.subr.mxu1 %v18486_v1 }
 0x48b   : > { %12740 = vmatmul.mubr.f32.vlgmr.msra.gmra.mrb[2].mxu0 %v12502_v30 }
 0x48c   : > { %12753 = vmatpush1.msra.mxu0 %v12519_v32  ;;  %12816 = vmatprep.mubr.f32.mxu0 %v18486_v1  ;;  %v14370_v32 = vand.u32 4294901760, %v14369_v29 }
 0x48d   : > { %12825 = vmatprep.subr.mxu0 %v19500_v16  ;;  %v14290_v16 = vsel %vm5844_vm7, %v14283_v12, %v14285_v5  ;;  %v16149_v5 = vpop.permute.xlu1 %16148 }
 0x48e   : > { %17804 = vmatmul.mubr.f32.vlgmr.msra.gmra.mrb[2].mxu1 %v12502_v30  ;;  %v19631_v19 = vand.u32 4294901760, %v14290_v16  ;;  %v16156_v12 = vsel %vm7706_vm9, %v16149_v5, %v16151_v0 }
 0x48f   : > { %17807 = vmatpush3.msra.mxu1 %v12977_v6  ;;  %17808 = vmatprep.mubr.msk.f32.mxu1 %vm18487_vm1, %v18486_v1  ;;  %v19753_v15 = vand.u32 4294901760, %v16156_v12 }
 0x490   : > { %17811 = vmatprep.subr.mxu1 %v18486_v1  ;;  %v14384_v23 = vsub.f32 %v14290_v16, %v19631_v19 }
 0x493   : > { %12818 = vmatmul.mubr.f32.vlgmr.msra.gmra.mrb[2].mxu0 %v19509_v22 }
 0x494   : > { %12827 = vmatpush1.msra.mxu0 %v19513_v24  ;;  %12890 = vmatprep.mubr.f32.mxu0 %v18486_v1  ;;  %v14380_v24 = vsub.f32 %v19622_v14, %v14379_v20 }
 0x495   : > { %13367 = vmatprep.subr.mxu0 %v19558_v42 }
 0x496   : > { %17809 = vmatmul.mubr.f32.vlgmr.msra.gmra.mrb[2].mxu1 %v19509_v22  ;;  %v14381_v28 = vand.u32 4294901760, %v14380_v24 }
 0x497   : > { %17812 = vmatpush3.msra.mxu1 %v19519_v27  ;;  %17813 = vmatprep.mubr.msk.f32.mxu1 %vm18487_vm1, %v18486_v1  ;;  %v14385_v27 = vand.u32 4294901760, %v14384_v23 }
 0x498   : > { %17816 = vmatprep.subr.mxu1 %v18486_v1 }
 0x499   : > { %v14386_v31 = vsub.f32 %v14384_v23, %v14385_v27 }
 0x49b   : > { %12892 = vmatmul.mubr.f32.vlgmr.msra.gmra.mrb[2].mxu0 %v19509_v22  ;;  %v14387_v34 = vand.u32 4294901760, %v14386_v31 }
 0x49c   : > { %13369 = vmatpush1.msra.mxu0 %v19571_v50  ;;  %13432 = vmatprep.mubr.f32.mxu0 %v18486_v1 }
 0x49d   : > { %13449 = vmatprep.subr.mxu0 %v13448_v59 }
 0x49e   : > { %17814 = vmatmul.mubr.f32.vlgmr.msra.gmra.mrb[2].mxu1 %v19509_v22  ;;  %v19638_v22 = vand.u32 4294901760, %v14292_v18 }
 0x49f   : > { %17817 = vmatpush3.msra.mxu1 %v19577_v53  ;;  %17818 = vmatprep.mubr.msk.f32.mxu1 %vm18487_vm1, %v18486_v1 }
 0x4a0   : > { %17821 = vmatprep.subr.mxu1 %v18486_v1  ;;  %v14842_v26 = vsub.f32 %v14292_v18, %v19638_v22 }
 0x4a2   : > { %v14843_v30 = vand.u32 4294901760, %v14842_v26 }
 0x4a3   : > { %13438 = vmatmul.mubr.f32.vlgmr.msra.gmra.mrb[2].mxu0 %v13437_v63 }
 0x4a4   : > { %13455 = vmatpush1.msra.mxu0 %v13454_v2  ;;  %13518 = vmatprep.mubr.f32.mxu0 %v18486_v1  ;;  %v14844_v33 = vsub.f32 %v14842_v26, %v14843_v30 }
 0x4a5   : > { %13528 = vmatprep.subr.mxu0 %v13445_v45 }
 0x4a6   : > { %17819 = vmatmul.mubr.f32.vlgmr.msra.gmra.mrb[2].mxu1 %v13437_v63  ;;  %v14845_v6 = vand.u32 4294901760, %v14844_v33 }
 0x4a7   : > { %17822 = vmatpush3.msra.mxu1 %v13912_v3  ;;  %17823 = vmatprep.mubr.msk.f32.mxu1 %vm18487_vm1, %v18486_v1  ;;  %v17176_v3 = vld [vmem:[%s19852_s3 + $0x40] sm:$0xff] }
 0x4a8   : > { %17826 = vmatprep.subr.mxu1 %v18486_v1  ;;  %v16163_v9 = vsel %vm260_vm0, %v17176_v3, 0 }
 0x4a9   : > { %v19749_v13 = vand.u32 4294901760, %v16163_v9 }
 0x4ab   : > { %13520 = vmatmul.mubr.f32.vlgmr.msra.gmra.mrb[2].mxu0 %v19567_v48 }
 0x4ac   : > { %13531 = vmatpush1.msra.mxu0 %v13451_v54  ;;  %13594 = vmatprep.mubr.f32.mxu0 %v18486_v1 }
 0x4ad   : > { %13604 = vmatprep.subr.mxu0 %v19558_v42 }
 0x4ae   : > { %17824 = vmatmul.mubr.f32.vlgmr.msra.gmra.mrb[2].mxu1 %v19567_v48 }
 0x4af   : > { %17827 = vmatpush3.msra.mxu1 %v13909_v57  ;;  %17828 = vmatprep.mubr.msk.f32.mxu1 %vm18487_vm1, %v18486_v1 }
 0x4b0   : > { %17831 = vmatprep.subr.mxu1 %v18486_v1 }
 0x4b3   : > { %13597 = vmatmul.mubr.f32.vlgmr.msra.gmra.mrb[2].mxu0 %v13434_v52 }
 0x4b4   : > { %13606 = vmatpush1.msra.mxu0 %v19571_v50  ;;  %13669 = vmatprep.mubr.f32.mxu0 %v18486_v1 }
 0x4b5   : > { %13682 = vmatprep.subr.mxu0 %v13446_v51  ;;  %v15313_v51 = vsub.f32 %v15311_v7, %v15312_v47 }
 0x4b6   : > { %17829 = vmatmul.mubr.f32.vlgmr.msra.gmra.mrb[2].mxu1 %v13434_v52 }
 0x4b7   : > { %17832 = vmatpush3.msra.mxu1 %v19577_v53  ;;  %17833 = vmatprep.mubr.msk.f32.mxu1 %vm18487_vm1, %v18486_v1  ;;  %v15314_v55 = vand.u32 4294901760, %v15313_v51 }
 0x4b8   : > { %17836 = vmatprep.subr.mxu1 %v18486_v1 }
 0x4bb   : > { %13673 = vmatmul.mubr.f32.vlgmr.msra.gmra.mrb[2].mxu0 %v13435_v56 }
 0x4bc   : > { %13686 = vmatpush1.msra.mxu0 %v13452_v58  ;;  %13749 = vmatprep.mubr.f32.mxu0 %v18486_v1 }
 0x4bd   : > { %13758 = vmatprep.subr.mxu0 %v19558_v42  ;;  %v15222_v42 = vpop.permute.xlu0 %15221 }
 0x4be   : > { %17834 = vmatmul.mubr.f32.vlgmr.msra.gmra.mrb[2].mxu1 %v13435_v56  ;;  %v15225_v45 = vsel %vm6775_vm8, %v15220_v35, %v15222_v42 }
 0x4bf   : > { %17837 = vmatpush3.msra.mxu1 %v13910_v61  ;;  %17838 = vmatprep.mubr.msk.f32.mxu1 %vm18487_vm1, %v18486_v1  ;;  %v19701_v49 = vand.u32 4294901760, %v15225_v45 }
 0x4c0   : > { %17841 = vmatprep.subr.mxu1 %v18486_v1 }
 0x4c1   : > { %v16153_v63 = vpop.permute.xlu0 %16152 }
 0x4c2   : > { %v16157_v2 = vsel %vm7706_vm9, %v16151_v0, %v16153_v63 }
 0x4c3   : > { %13751 = vmatmul.mubr.f32.vlgmr.msra.gmra.mrb[2].mxu0 %v19567_v48  ;;  %v19740_v4 = vand.u32 4294901760, %v16157_v2 }
 0x4c4   : > { %13760 = vmatpush1.msra.mxu0 %v19571_v50  ;;  %13823 = vmatprep.mubr.f32.mxu0 %v18486_v1  ;;  %v15317_v50 = vsub.f32 %v15223_v43, %v19695_v46 }
 0x4c5   : > { %14300 = vmatprep.subr.mxu0 %v19616_v11  ;;  %v16244_v10 = vsub.f32 %v16157_v2, %v19740_v4 }
 0x4c6   : > { %17839 = vmatmul.mubr.f32.vlgmr.msra.gmra.mrb[2].mxu1 %v19567_v48  ;;  %v15318_v54 = vand.u32 4294901760, %v15317_v50 }
 0x4c7   : > { %17842 = vmatpush3.msra.mxu1 %v19577_v53  ;;  %17843 = vmatprep.mubr.msk.f32.mxu1 %vm18487_vm1, %v18486_v1  ;;  %v15775_v53 = vsub.f32 %v15225_v45, %v19701_v49  ;;  %v16245_v16 = vand.u32 4294901760, %v16244_v10 }
 0x4c8   : > { %17846 = vmatprep.subr.mxu1 %v18486_v1  ;;  %v15319_v58 = vsub.f32 %v15317_v50, %v15318_v54 }
 0x4c9   : > { %v15776_v57 = vand.u32 4294901760, %v15775_v53 }
 0x4ca   : > { %v15320_v61 = vand.u32 4294901760, %v15319_v58 }
 0x4cb   : > { %13825 = vmatmul.mubr.f32.vlgmr.msra.gmra.mrb[2].mxu0 %v19567_v48  ;;  %v15777_v60 = vsub.f32 %v15775_v53, %v15776_v57 }
 0x4cc   : > { %14302 = vmatpush1.msra.mxu0 %v19631_v19  ;;  %14365 = vmatprep.mubr.f32.mxu0 %v18486_v1 }
 0x4cd   : > { %14382 = vmatprep.subr.mxu0 %v14381_v28  ;;  %v15778_v62 = vand.u32 4294901760, %v15777_v60 }
 0x4ce   : > { %17844 = vmatmul.mubr.f32.vlgmr.msra.gmra.mrb[2].mxu1 %v19567_v48  ;;  %v15300_v48 = vsub.f32 %v15230_v41, %v19691_v44 }
 0x4cf   : > { %17847 = vmatpush3.msra.mxu1 %v19638_v22  ;;  %17848 = vmatprep.mubr.msk.f32.mxu1 %vm18487_vm1, %v18486_v1 }
 0x4d0   : > { %17851 = vmatprep.subr.mxu1 %v18486_v1  ;;  %v15301_v52 = vand.u32 4294901760, %v15300_v48 }
 0x4d2   : > { %v15302_v56 = vsub.f32 %v15300_v48, %v15301_v52 }
 0x4d3   : > { %14371 = vmatmul.mubr.f32.vlgmr.msra.gmra.mrb[2].mxu0 %v14370_v32 }
 0x4d4   : > { %14388 = vmatpush1.msra.mxu0 %v14387_v34  ;;  %14451 = vmatprep.mubr.f32.mxu0 %v18486_v1  ;;  %v15303_v59 = vand.u32 4294901760, %v15302_v56 }
 0x4d5   : > { %14461 = vmatprep.subr.mxu0 %v19622_v14 }
 0x4d6   : > { %17849 = vmatmul.mubr.f32.vlgmr.msra.gmra.mrb[2].mxu1 %v14370_v32  ;;  %v8684_v32 = vpop.permute.xlu1 %8683 }
 0x4d7   : > { %17852 = vmatpush3.msra.mxu1 %v14845_v6  ;;  %17853 = vmatprep.mubr.msk.f32.mxu1 %vm18487_vm1, %v18486_v1 }
 0x4d8   : > { %17856 = vmatprep.subr.mxu1 %v18486_v1 }
 0x4db   : > { %14453 = vmatmul.mubr.f32.vlgmr.msra.gmra.mrb[2].mxu0 %v19627_v17 }
 0x4dc   : > { %14464 = vmatpush1.msra.mxu0 %v14384_v23  ;;  %14527 = vmatprep.mubr.f32.mxu0 %v18486_v1 }
 0x4dd   : > { %14537 = vmatprep.subr.mxu0 %v19616_v11 }
 0x4de   : > { %17854 = vmatmul.mubr.f32.vlgmr.msra.gmra.mrb[2].mxu1 %v19627_v17 }
 0x4df   : > { %17857 = vmatpush3.msra.mxu1 %v14842_v26  ;;  %17858 = vmatprep.mubr.msk.f32.mxu1 %vm18487_vm1, %v18486_v1 }
 0x4e0   : > { %17861 = vmatprep.subr.mxu1 %v18486_v1 }
 0x4e3   : > { %14530 = vmatmul.mubr.f32.vlgmr.msra.gmra.mrb[2].mxu0 %v14367_v21 }
 0x4e4   : > { %14539 = vmatpush1.msra.mxu0 %v19631_v19  ;;  %14602 = vmatprep.mubr.f32.mxu0 %v18486_v1 }
 0x4e5   : > { %14615 = vmatprep.subr.mxu0 %v14379_v20  ;;  %v16246_v20 = vsub.f32 %v16244_v10, %v16245_v16 }
 0x4e6   : > { %17859 = vmatmul.mubr.f32.vlgmr.msra.gmra.mrb[2].mxu1 %v14367_v21 }
 0x4e7   : > { %17862 = vmatpush3.msra.mxu1 %v19638_v22  ;;  %17863 = vmatprep.mubr.msk.f32.mxu1 %vm18487_vm1, %v18486_v1  ;;  %v16247_v24 = vand.u32 4294901760, %v16246_v20 }
 0x4e8   : > { %17866 = vmatprep.subr.mxu1 %v18486_v1 }
 0x4eb   : > { %14606 = vmatmul.mubr.f32.vlgmr.msra.gmra.mrb[2].mxu0 %v14368_v25 }
 0x4ec   : > { %14619 = vmatpush1.msra.mxu0 %v14385_v27  ;;  %14682 = vmatprep.mubr.f32.mxu0 %v18486_v1 }
 0x4ed   : > { %14691 = vmatprep.subr.mxu0 %v19616_v11  ;;  %v16155_v11 = vpop.permute.xlu0 %16154 }
 0x4ee   : > { %17864 = vmatmul.mubr.f32.vlgmr.msra.gmra.mrb[2].mxu1 %v14368_v25  ;;  %v16158_v14 = vsel %vm7706_vm9, %v16153_v63, %v16155_v11 }
 0x4ef   : > { %17867 = vmatpush3.msra.mxu1 %v14843_v30  ;;  %17868 = vmatprep.mubr.msk.f32.mxu1 %vm18487_vm1, %v18486_v1  ;;  %v16631_v18 = vand.u32 4294901760, %v16158_v14 }
 0x4f0   : > { %17871 = vmatprep.subr.mxu1 %v18486_v1 }
 0x4f3   : > { %14684 = vmatmul.mubr.f32.vlgmr.msra.gmra.mrb[2].mxu0 %v19627_v17 }
 0x4f4   : > { %14693 = vmatpush1.msra.mxu0 %v19631_v19  ;;  %14756 = vmatprep.mubr.f32.mxu0 %v18486_v1  ;;  %v16250_v19 = vsub.f32 %v16156_v12, %v19753_v15 }
 0x4f5   : > { %15233 = vmatprep.subr.mxu0 %v19682_v39 }
 0x4f6   : > { %17869 = vmatmul.mubr.f32.vlgmr.msra.gmra.mrb[2].mxu1 %v19627_v17  ;;  %v16251_v23 = vand.u32 4294901760, %v16250_v19 }
 0x4f7   : > { %17872 = vmatpush3.msra.mxu1 %v19638_v22  ;;  %17873 = vmatprep.mubr.msk.f32.mxu1 %vm18487_vm1, %v18486_v1  ;;  %v16708_v22 = vsub.f32 %v16158_v14, %v16631_v18 }
 0x4f8   : > { %17876 = vmatprep.subr.mxu1 %v18486_v1  ;;  %v16252_v27 = vsub.f32 %v16250_v19, %v16251_v23 }
 0x4f9   : > { %v16709_v26 = vand.u32 4294901760, %v16708_v22 }
 0x4fa   : > { %v16253_v30 = vand.u32 4294901760, %v16252_v27 }
 0x4fb   : > { %14758 = vmatmul.mubr.f32.vlgmr.msra.gmra.mrb[2].mxu0 %v19627_v17  ;;  %v16710_v29 = vsub.f32 %v16708_v22, %v16709_v26 }
 0x4fc   : > { %15235 = vmatpush1.msra.mxu0 %v19695_v46  ;;  %15298 = vmatprep.mubr.f32.mxu0 %v18486_v1 }
 0x4fd   : > { %15315 = vmatprep.subr.mxu0 %v15314_v55  ;;  %v16711_v31 = vand.u32 4294901760, %v16710_v29 }
 0x4fe   : > { %17874 = vmatmul.mubr.f32.vlgmr.msra.gmra.mrb[2].mxu1 %v19627_v17  ;;  %v16233_v17 = vsub.f32 %v16163_v9, %v19749_v13 }
 0x4ff   : > { %17877 = vmatpush3.msra.mxu1 %v19701_v49  ;;  %17878 = vmatprep.mubr.msk.f32.mxu1 %vm18487_vm1, %v18486_v1 }
 0x500   : > { %17881 = vmatprep.subr.mxu1 %v18486_v1  ;;  %v16234_v21 = vand.u32 4294901760, %v16233_v17 }
 0x502   : > { %v16235_v25 = vsub.f32 %v16233_v17, %v16234_v21 }
 0x503   : > { %15304 = vmatmul.mubr.f32.vlgmr.msra.gmra.mrb[2].mxu0 %v15303_v59 }
 0x504   : > { %15321 = vmatpush1.msra.mxu0 %v15320_v61  ;;  %15384 = vmatprep.mubr.f32.mxu0 %v18486_v1  ;;  %v16236_v28 = vand.u32 4294901760, %v16235_v25 }
 0x505   : > { %15394 = vmatprep.subr.mxu0 %v15311_v7 }
 0x506   : > { %17879 = vmatmul.mubr.f32.vlgmr.msra.gmra.mrb[2].mxu1 %v15303_v59 }
 0x507   : > { %17882 = vmatpush3.msra.mxu1 %v15778_v62  ;;  %17883 = vmatprep.mubr.msk.f32.mxu1 %vm18487_vm1, %v18486_v1 }
 0x508   : > { %17886 = vmatprep.subr.mxu1 %v18486_v1 }
 0x50b   : > { %15386 = vmatmul.mubr.f32.vlgmr.msra.gmra.mrb[2].mxu0 %v19691_v44 }
 0x50c   : > { %15397 = vmatpush1.msra.mxu0 %v15317_v50  ;;  %15460 = vmatprep.mubr.f32.mxu0 %v18486_v1 }
 0x50d   : > { %15470 = vmatprep.subr.mxu0 %v19682_v39 }
 0x50e   : > { %17884 = vmatmul.mubr.f32.vlgmr.msra.gmra.mrb[2].mxu1 %v19691_v44 }
 0x50f   : > { %17887 = vmatpush3.msra.mxu1 %v15775_v53  ;;  %17888 = vmatprep.mubr.msk.f32.mxu1 %vm18487_vm1, %v18486_v1 }
 0x510   : > { %17891 = vmatprep.subr.mxu1 %v18486_v1 }
 0x513   : > { %15463 = vmatmul.mubr.f32.vlgmr.msra.gmra.mrb[2].mxu0 %v15300_v48 }
 0x514   : > { %15472 = vmatpush1.msra.mxu0 %v19695_v46  ;;  %15535 = vmatprep.mubr.f32.mxu0 %v18486_v1 }
 0x515   : > { %15548 = vmatprep.subr.mxu0 %v15312_v47 }
 0x516   : > { %17889 = vmatmul.mubr.f32.vlgmr.msra.gmra.mrb[2].mxu1 %v15300_v48 }
 0x517   : > { %17892 = vmatpush3.msra.mxu1 %v19701_v49  ;;  %17893 = vmatprep.mubr.msk.f32.mxu1 %vm18487_vm1, %v18486_v1 }
 0x518   : > { %17896 = vmatprep.subr.mxu1 %v18486_v1 }
 0x51b   : > { %15539 = vmatmul.mubr.f32.vlgmr.msra.gmra.mrb[2].mxu0 %v15301_v52 }
 0x51c   : > { %15552 = vmatpush1.msra.mxu0 %v15318_v54  ;;  %15615 = vmatprep.mubr.f32.mxu0 %v18486_v1 }
 0x51d   : > { %15624 = vmatprep.subr.mxu0 %v19682_v39 }
 0x51e   : > { %17894 = vmatmul.mubr.f32.vlgmr.msra.gmra.mrb[2].mxu1 %v15301_v52 }
 0x51f   : > { %17897 = vmatpush3.msra.mxu1 %v15776_v57  ;;  %17898 = vmatprep.mubr.msk.f32.mxu1 %vm18487_vm1, %v18486_v1 }
 0x520   : > { %17901 = vmatprep.subr.mxu1 %v18486_v1 }
 0x523   : > { %15617 = vmatmul.mubr.f32.vlgmr.msra.gmra.mrb[2].mxu0 %v19691_v44 }
 0x524   : > { %15626 = vmatpush1.msra.mxu0 %v19695_v46  ;;  %15689 = vmatprep.mubr.f32.mxu0 %v18486_v1 }
 0x525   : > { %16166 = vmatprep.subr.mxu0 %v19740_v4 }
 0x526   : > { %17899 = vmatmul.mubr.f32.vlgmr.msra.gmra.mrb[2].mxu1 %v19691_v44 }
 0x527   : > { %17902 = vmatpush3.msra.mxu1 %v19701_v49  ;;  %17903 = vmatprep.mubr.msk.f32.mxu1 %vm18487_vm1, %v18486_v1 }
 0x528   : > { %17906 = vmatprep.subr.mxu1 %v18486_v1 }
 0x52b   : > { %15691 = vmatmul.mubr.f32.vlgmr.msra.gmra.mrb[2].mxu0 %v19691_v44 }
 0x52c   : > { %16168 = vmatpush1.msra.mxu0 %v19753_v15  ;;  %16231 = vmatprep.mubr.f32.mxu0 %v18486_v1 }
 0x52d   : > { %16248 = vmatprep.subr.mxu0 %v16247_v24 }
 0x52e   : > { %17904 = vmatmul.mubr.f32.vlgmr.msra.gmra.mrb[2].mxu1 %v19691_v44 }
 0x52f   : > { %17907 = vmatpush3.msra.mxu1 %v16631_v18  ;;  %17908 = vmatprep.mubr.msk.f32.mxu1 %vm18487_vm1, %v18486_v1 }
 0x530   : > { %17911 = vmatprep.subr.mxu1 %v18486_v1 }
 0x533   : > { %16237 = vmatmul.mubr.f32.vlgmr.msra.gmra.mrb[2].mxu0 %v16236_v28 }
 0x534   : > { %16254 = vmatpush1.msra.mxu0 %v16253_v30  ;;  %16317 = vmatprep.mubr.f32.mxu0 %v18486_v1 }
 0x535   : > { %16327 = vmatprep.subr.mxu0 %v16244_v10 }
 0x536   : > { %17909 = vmatmul.mubr.f32.vlgmr.msra.gmra.mrb[2].mxu1 %v16236_v28 }
 0x537   : > { %17912 = vmatpush3.msra.mxu1 %v16711_v31  ;;  %17913 = vmatprep.mubr.msk.f32.mxu1 %vm18487_vm1, %v18486_v1 }
 0x538   : > { %17916 = vmatprep.subr.mxu1 %v18486_v1 }
 0x53b   : > { %16319 = vmatmul.mubr.f32.vlgmr.msra.gmra.mrb[2].mxu0 %v19749_v13 }
 0x53c   : > { %16330 = vmatpush1.msra.mxu0 %v16250_v19  ;;  %16393 = vmatprep.mubr.f32.mxu0 %v18486_v1 }
 0x53d   : > { %16403 = vmatprep.subr.mxu0 %v19740_v4 }
 0x53e   : > { %17914 = vmatmul.mubr.f32.vlgmr.msra.gmra.mrb[2].mxu1 %v19749_v13 }
 0x53f   : > { %17917 = vmatpush3.msra.mxu1 %v16708_v22  ;;  %17918 = vmatprep.mubr.msk.f32.mxu1 %vm18487_vm1, %v18486_v1 }
 0x540   : > { %17921 = vmatprep.subr.mxu1 %v18486_v1 }
 0x543   : > { %16396 = vmatmul.mubr.f32.vlgmr.msra.gmra.mrb[2].mxu0 %v16233_v17 }
 0x544   : > { %16405 = vmatpush1.msra.mxu0 %v19753_v15  ;;  %16468 = vmatprep.mubr.f32.mxu0 %v18486_v1 }
 0x545   : > { %16481 = vmatprep.subr.mxu0 %v16245_v16 }
 0x546   : > { %17919 = vmatmul.mubr.f32.vlgmr.msra.gmra.mrb[2].mxu1 %v16233_v17 }
 0x547   : > { %17922 = vmatpush3.msra.mxu1 %v16631_v18  ;;  %17923 = vmatprep.mubr.msk.f32.mxu1 %vm18487_vm1, %v18486_v1 }
 0x548   : > { %17926 = vmatprep.subr.mxu1 %v18486_v1 }
 0x54b   : > { %16472 = vmatmul.mubr.f32.vlgmr.msra.gmra.mrb[2].mxu0 %v16234_v21 }
 0x54c   : > { %16485 = vmatpush1.msra.mxu0 %v16251_v23  ;;  %16548 = vmatprep.mubr.f32.mxu0 %v18486_v1 }
 0x54d   : > { %16557 = vmatprep.subr.mxu0 %v19740_v4 }
 0x54e   : > { %17924 = vmatmul.mubr.f32.vlgmr.msra.gmra.mrb[2].mxu1 %v16234_v21 }
 0x54f   : > { %17927 = vmatpush3.msra.mxu1 %v16709_v26  ;;  %17928 = vmatprep.mubr.msk.f32.mxu1 %vm18487_vm1, %v18486_v1 }
 0x550   : > { %17931 = vmatprep.subr.mxu1 %v18486_v1 }
 0x553   : > { %16550 = vmatmul.mubr.f32.vlgmr.msra.gmra.mrb[2].mxu0 %v19749_v13 }
 0x554   : > { %16559 = vmatpush1.msra.mxu0 %v19753_v15  ;;  %16622 = vmatprep.mubr.f32.mxu0 %v18486_v1 }
 0x556   : > { %17929 = vmatmul.mubr.f32.vlgmr.msra.gmra.mrb[2].mxu1 %v19749_v13 }
 0x557   : > { %17932 = vmatpush3.msra.mxu1 %v16631_v18  ;;  %17933 = vmatprep.mubr.msk.f32.mxu1 %vm18487_vm1, %v18486_v1 }
 0x55b   : > { %16624 = vmatmul.mubr.f32.vlgmr.msra.gmra.mrb[2].mxu0 %v19749_v13 }
 0x55e   : > { %17934 = vmatmul.mubr.f32.vlgmr.msra.gmra.mrb[2].mxu1 %v19749_v13 }
 0x62e   : > { %v16625_v33 = vpop.f32.mrb[2].mxu0 }
 0x62f   : > { %v17939_v34 = vadd.f32 %v16625_v33, %v8684_v32  ;;  %v16627_v6 = vpop.f32.mrb[3].mxu0 }
 0x630   : > { %v17940_v8 = vadd.f32 %v16627_v6, %v8684_v32 }
 0x631   : > { %v17072_v35 = vpop.f32.mrb[2].mxu1  ;;  %17079 = vst [vmem:[%s244_s11] sm:$0xff] %v17939_v34 }
 0x632   : > { %v17941_v36 = vadd.f32 %v17072_v35, %v8684_v32  ;;  %17080 = vst [vmem:[%s244_s11 + $0x8] sm:$0xff] %v17940_v8  ;;  %v17935_v1 = vpop.f32.mrb[3].mxu1 }
 0x634   : > { %17081 = vst [vmem:[%s244_s11 + $0x10] sm:$0xff] %v17941_v36 }
 0x635   : > { %18435 = shalt.err (!%p18432_p3)
}
 0x636   : > { %s18436_s16 = scalar_lea.hbm %s19807_s12, 384  ;;  %s18440_s19 = scalar_lea.hbm %s19855_s6, 768 }
 0x637   : > { %p18437_p4 = scmp.ne.s32.totalorder %s19807_s12, %s18436_s16  ;;  %p18441_p9 = scmp.lt.u32.totalorder %s19807_s12, %s19855_s6 }
 0x638   : > { %p18442_p10 = scmp.lt.u32.totalorder %s18440_s19, %s18436_s16  ;;  %p18444_p12 = scmp.lt.u32.totalorder %s18436_s16, %s19807_s12 }
 0x639   : > { %p18438_p7 = pnand %p18437_p4, %p18572_p5 }
 0x63a   : > { %p18443_p11 = por %p18442_p10, %p18441_p9 }
 0x63b   : > { %p18439_p8 = pneg %p18438_p7 }
 0x63c   : > { %p18445_p13 = por %p18444_p12, %p18443_p11 }
 0x63e   : > { %p18446_p0 = pnand %p18445_p13, %p18439_p8 }
 0x640   : > { %18449 = shalt.err (!%p18446_p0)
}
 0x641   : > { %18369 = dma.vmem_to_hbm [thread:$0]  (%p18572_p5), %s19809_s14, 384, %s19807_s12, %s17083_s25  }
 0x642 PF: > { %p18375_p1 = scmp.ge.s32.totalorder %s18484_s24, 2  ;;  %s17109_s11 = sand.u32 1, %s18472_s21  }
 0x643   : > { %s17110_s9 = scalar_lea.sflag [#allocation4], %s17109_s11 }
 0x644   : > { %p18372_p2 = pnand %p18375_p1, %p18576_p6 }
 0x646   : > { %18467 = dma.done.wait (!%p18372_p2), %s17110_s9, 384  }
 0x647   : > { %18469 = vsyncadd (!%p18372_p2), %s17110_s9, 4294966912  ;;  %p16_p3 = scmp.ge.s32.totalorder %s18559_s27, 4   ;;  %s19858_s21 = smov %s18476_s22 }
 0x648   : > { %s19859_s22 = smov %s18480_s23  ;;  %s19860_s23 = smov %s18570_s30 }
 0x649   : > { %s19861_s24 = smov %s18559_s27  ;;  %18 = sbr.rel (!%p16_p3) target bundleno = 3 (0x3), region = 95 }
 0x650   :  { %17115 = vsyncpa [#allocation4], 1 }
 0x651   :  { %17117 = vsyncpa [#allocation4 + $0x1], 1 }

</bundles_post_ra>
